<compile_context>
chip_gen: v7x
topology: tpu7x:2x2x1
jax: 0.10.0
libtpu: 0.0.40
codegen_flags: <defaults>
</compile_context>

<pallas_src>
import math
import functools

import jax
import jax.numpy as jnp
from jax.experimental import pallas as pl
from jax.experimental.pallas import tpu as pltpu


def _mha_kernel(mask_ref, q_ref, k_ref, v_ref,
                wqkv_ref, bqkv_ref, wo_ref, bo_ref,
                *refs,
                num_heads: int, head_size: int, return_attention: bool):
    if return_attention:
        out_ref, attn_ref, kp_ref, vp_ref = refs
    else:
        out_ref, kp_ref, vp_ref = refs
        attn_ref = None

    cdt = q_ref.dtype                       # compute dtype chosen by wrapper
    model_size = num_heads * head_size
    neg_big = jnp.float32(-1e30)            # finite: fully-masked row -> uniform, no NaN

    # ---- K/V projections: computed once per batch element, cached in VMEM
    # scratch and reused across all q-tiles of this batch element.
    @pl.when(pl.program_id(1) == 0)
    def _():
        kp = jnp.dot(k_ref[0], wqkv_ref[1],
                     preferred_element_type=jnp.float32) + bqkv_ref[1]
        vp = jnp.dot(v_ref[0], wqkv_ref[2],
                     preferred_element_type=jnp.float32) + bqkv_ref[2]
        kp_ref[...] = kp.astype(kp_ref.dtype)
        vp_ref[...] = vp.astype(vp_ref.dtype)

    # ---- Q projection for this tile (1/sqrt(hs) pre-folded into wq / bq).
    qp = jnp.dot(q_ref[0], wqkv_ref[0],
                 preferred_element_type=jnp.float32) + bqkv_ref[0]
    qp = qp.astype(cdt)                                        # [TQ, D]

    tq = qp.shape[0]
    mk = kp_ref.shape[0]

    # Head-major relayouts (XLU), then leading-batch MXU einsums over heads.
    qh = pltpu.einshape("qhd->hqd", qp.reshape(tq, num_heads, head_size))
    kh = pltpu.einshape("mhd->hmd", kp_ref[...].reshape(mk, num_heads, head_size))
    vh = pltpu.einshape("mhd->hmd", vp_ref[...].reshape(mk, num_heads, head_size))

    # NT scores for all heads at once, f32 accumulation.
    scores = jnp.einsum("hqd,hkd->hqk", qh, kh,
                        preferred_element_type=jnp.float32)    # [H, TQ, Mk]

    # Single additive mask bias (one select on [1, Mk], broadcast over heads).
    bias = jnp.where(mask_ref[0] > 0.0, 0.0, neg_big)          # [1, Mk] f32
    scores = scores + bias[None, :, :]

    # Stable softmax in f32: exp on the EUP, normalization via approx
    # reciprocal (EUP) refined with one Newton step.
    m = jnp.max(scores, axis=-1, keepdims=True)
    e = jnp.exp(scores - m)
    s = jnp.sum(e, axis=-1, keepdims=True)
    inv = pl.reciprocal(s, approx=True)
    inv = inv * (2.0 - s * inv)
    attn = e * inv                                             # [H, TQ, Mk] f32

    if attn_ref is not None:
        attn_ref[0] = attn.astype(attn_ref.dtype)              # single store

    # Context for all heads, then ONE K=D output projection.
    ctx = jnp.einsum("hqk,hkd->hqd", attn.astype(cdt), vh,
                     preferred_element_type=jnp.float32)       # [H, TQ, hs]
    ctx = pltpu.einshape("hqd->qhd", ctx.astype(cdt)).reshape(tq, model_size)
    out = jnp.dot(ctx, wo_ref[...], preferred_element_type=jnp.float32)
    out_ref[0] = out + bo_ref[...]


def _vmem_capacity_bytes() -> int:
    try:
        return int(pltpu.get_tpu_info().vmem_capacity_bytes)
    except Exception:
        return 128 * 1024 * 1024


def multi_headed_attention(k, v, q, mask, params, *, num_heads: int,
                           q_tile=None, use_bf16: bool = True,
                           return_attention: bool = False):
    """k, v: [B, Mk, D]; q: [B, Mq, D]; mask: [B, 1, Mk] float (1 keep / 0 mask)."""
    B, Mq, D = q.shape
    _, Mk, _ = k.shape
    assert k.shape == v.shape == (B, Mk, D)
    assert mask.shape == (B, 1, Mk)
    assert D % num_heads == 0
    head_size = D // num_heads

    comp_dtype = jnp.bfloat16 if use_bf16 else jnp.float32

    # Per-generation budgeting (v7x: 64 MiB VMEM; v5e/v6e: 128 MiB).
    vmem_cap = _vmem_capacity_bytes()
    big_vmem = vmem_cap >= 96 * 1024 * 1024
    if q_tile is None:
        cap = 256 if big_vmem else 128
        if Mq <= cap:
            q_tile = Mq
        else:
            q_tile = cap
            while Mq % q_tile:
                q_tile //= 2
    assert q_tile >= 1 and Mq % q_tile == 0
    n_q_tiles = Mq // q_tile
    vmem_limit = min(int(vmem_cap * 3 // 4), 100 * 1024 * 1024)

    scale = 1.0 / math.sqrt(head_size)

    # Pack Q/K/V weights into one buffer, fold the 1/sqrt(hs) scale into
    # wq/bq once, and cast all large operands to the compute dtype at the HBM
    # boundary (halves DMA bytes + VMEM on the bf16 path).  Biases stay f32.
    wqkv = jnp.stack([params["wq"] * scale, params["wk"],
                      params["wv"]]).astype(comp_dtype)                 # [3, D, D]
    bqkv = jnp.stack([params["bq"] * scale, params["bk"],
                      params["bv"]])[:, None, :].astype(jnp.float32)    # [3, 1, D]
    wo = params["wo"].astype(comp_dtype)                                # [D, D]
    bo2d = params["bo"][None, :].astype(jnp.float32)                    # [1, D]

    q_in = q.astype(comp_dtype)
    k_in = k.astype(comp_dtype)
    v_in = v.astype(comp_dtype)
    mask_f = mask.astype(jnp.float32)

    # Grid-/batch-invariant blocks: single-buffered (no wasted double buffer).
    in_specs = [
        pl.BlockSpec((1, 1, Mk), lambda b, qi: (b, 0, 0),
                     pipeline_mode=pl.Buffered(1)),                     # mask
        pl.BlockSpec((1, q_tile, D), lambda b, qi: (b, qi, 0)),         # q (tiled)
        pl.BlockSpec((1, Mk, D), lambda b, qi: (b, 0, 0),
                     pipeline_mode=pl.Buffered(1)),                     # k
        pl.BlockSpec((1, Mk, D), lambda b, qi: (b, 0, 0),
                     pipeline_mode=pl.Buffered(1)),                     # v
        pl.BlockSpec((3, D, D), lambda b, qi: (0, 0, 0),
                     pipeline_mode=pl.Buffered(1)),                     # wqkv
        pl.BlockSpec((3, 1, D), lambda b, qi: (0, 0, 0),
                     pipeline_mode=pl.Buffered(1)),                     # bqkv
        pl.BlockSpec((D, D), lambda b, qi: (0, 0),
                     pipeline_mode=pl.Buffered(1)),                     # wo
        pl.BlockSpec((1, D), lambda b, qi: (0, 0),
                     pipeline_mode=pl.Buffered(1)),                     # bo
    ]

    out_shape = [jax.ShapeDtypeStruct((B, Mq, D), jnp.float32)]
    out_specs = [pl.BlockSpec((1, q_tile, D), lambda b, qi: (b, qi, 0))]
    if return_attention:
        # Attention map emitted in the compute dtype (bf16 on the fast path).
        out_shape.append(jax.ShapeDtypeStruct((B, num_heads, Mq, Mk), comp_dtype))
        out_specs.append(
            pl.BlockSpec((1, num_heads, q_tile, Mk), lambda b, qi: (b, 0, qi, 0)))

    kernel = functools.partial(
        _mha_kernel, num_heads=num_heads, head_size=head_size,
        return_attention=return_attention)

    outs = pl.pallas_call(
        kernel,
        out_shape=tuple(out_shape),
        grid_spec=pltpu.PrefetchScalarGridSpec(
            num_scalar_prefetch=0,
            grid=(B, n_q_tiles),
            in_specs=in_specs,
            out_specs=tuple(out_specs),
            scratch_shapes=[
                pltpu.VMEM((Mk, D), comp_dtype),   # cached K projection
                pltpu.VMEM((Mk, D), comp_dtype),   # cached V projection
            ]),
        compiler_params=pltpu.CompilerParams(
            dimension_semantics=("parallel", "arbitrary"),
            vmem_limit_bytes=vmem_limit),
    )(mask_f, q_in, k_in, v_in, wqkv, bqkv, wo, bo2d)

    if return_attention:
        return outs[0], outs[1]
    return outs[0]


def _reference(k, v, q, mask, params, num_heads):
    """Pure-JAX reference mirroring the PyTorch forward (eval mode, f32)."""
    B, M, D = q.shape
    hs = D // num_heads
    kp = k @ params["wk"] + params["bk"]
    vp = v @ params["wv"] + params["bv"]
    qp = q @ params["wq"] + params["bq"]

    def split(x):
        return x.reshape(B, -1, num_heads, hs).transpose(0, 2, 1, 3)

    kh, vh, qh = split(kp), split(vp), split(qp)
    qh = qh / math.sqrt(hs)
    scores = jnp.einsum("bhqd,bhkd->bhqk", qh, kh)
    scores = jnp.where(mask[:, :, None, :] > 0.0, scores, -jnp.inf)
    attn = jax.nn.softmax(scores, axis=-1)
    ctx = jnp.einsum("bhqk,bhkd->bhqd", attn, vh)
    ctx = ctx.transpose(0, 2, 1, 3).reshape(B, -1, D)
    out = ctx @ params["wo"] + params["bo"]
    return out, attn


if __name__ == "__main__":
    B, M, D, H = 2, 16, 32, 4

    key = jax.random.PRNGKey(0)
    keys = jax.random.split(key, 12)

    k = jax.random.normal(keys[0], (B, M, D), dtype=jnp.float32)
    v = jax.random.normal(keys[1], (B, M, D), dtype=jnp.float32)
    q = jax.random.normal(keys[2], (B, M, D), dtype=jnp.float32)

    # mask [B, 1, M]: mask out the last three key positions of batch 1.
    mask = jnp.ones((B, 1, M), dtype=jnp.float32)
    mask = mask.at[1, 0, M - 3:].set(0.0)

    bound = 1.0 / math.sqrt(D)
    params = {
        "wk": jax.random.uniform(keys[3], (D, D), jnp.float32, -bound, bound),
        "bk": jax.random.uniform(keys[4], (D,), jnp.float32, -bound, bound),
        "wv": jax.random.uniform(keys[5], (D, D), jnp.float32, -bound, bound),
        "bv": jax.random.uniform(keys[6], (D,), jnp.float32, -bound, bound),
        "wq": jax.random.uniform(keys[7], (D, D), jnp.float32, -bound, bound),
        "bq": jax.random.uniform(keys[8], (D,), jnp.float32, -bound, bound),
        "wo": jax.random.uniform(keys[9], (D, D), jnp.float32, -bound, bound),
        "bo": jax.random.uniform(keys[10], (D,), jnp.float32, -bound, bound),
    }

    ref_out, ref_attn = _reference(k, v, q, mask, params, H)

    # (1) Exact-semantics path: f32 operands, attention returned (f32).
    out32, attn32 = multi_headed_attention(
        k, v, q, mask, params, num_heads=H,
        q_tile=8, use_bf16=False, return_attention=True)
    out32 = jax.block_until_ready(out32)
    attn32 = jax.block_until_ready(attn32)
    assert out32.shape == (B, M, D) and attn32.shape == (B, H, M, M)
    assert jnp.allclose(out32, ref_out, atol=2e-5, rtol=2e-5)
    assert jnp.allclose(attn32, ref_attn, atol=2e-5, rtol=2e-5)

    # (2) Fast path (production default): bf16 HBM-boundary operands, f32
    #     accumulation + f32 softmax, no attention writeback.
    out_fast = multi_headed_attention(
        k, v, q, mask, params, num_heads=H, use_bf16=True)
    out_fast = jax.block_until_ready(out_fast)
    assert out_fast.shape == (B, M, D)
    assert jnp.allclose(out_fast, ref_out, atol=5e-2, rtol=5e-2)

    print("KERNEL_OK")
</pallas_src>

<mosaic_0001>
module attributes {stable_mosaic.version = 11 : i64} {
  func.func @_mha_kernel(%arg0: i32, %arg1: i32, %arg2: memref<1x1x16xf32, #tpu.memory_space<vmem>>, %arg3: memref<1x8x32xf32, #tpu.memory_space<vmem>>, %arg4: memref<1x16x32xf32, #tpu.memory_space<vmem>>, %arg5: memref<1x16x32xf32, #tpu.memory_space<vmem>>, %arg6: memref<3x32x32xf32, #tpu.memory_space<vmem>>, %arg7: memref<3x1x32xf32, #tpu.memory_space<vmem>>, %arg8: memref<32x32xf32, #tpu.memory_space<vmem>>, %arg9: memref<1x32xf32, #tpu.memory_space<vmem>>, %arg10: memref<1x8x32xf32, #tpu.memory_space<vmem>>, %arg11: memref<1x4x8x16xf32, #tpu.memory_space<vmem>>, %arg12: memref<16x32xf32, #tpu.memory_space<vmem>>, %arg13: memref<16x32xf32, #tpu.memory_space<vmem>>) attributes {dimension_semantics = [#tpu.dimension_semantics<parallel>, #tpu.dimension_semantics<arbitrary>], iteration_bounds = array<i64: 2, 2>, scalar_prefetch = 0 : i64, scratch_operands = 2 : i64, tpu.core_type = #tpu.core_type<tc>, window_params = [{pipeline_mode = #tpu.pipeline_mode<synchronous>, transform_indices = @transform_0, window_bounds = array<i64: 1, 1, 16>}, {transform_indices = @transform_1, window_bounds = array<i64: 1, 8, 32>}, {pipeline_mode = #tpu.pipeline_mode<synchronous>, transform_indices = @transform_2, window_bounds = array<i64: 1, 16, 32>}, {pipeline_mode = #tpu.pipeline_mode<synchronous>, transform_indices = @transform_3, window_bounds = array<i64: 1, 16, 32>}, {pipeline_mode = #tpu.pipeline_mode<synchronous>, transform_indices = @transform_4, window_bounds = array<i64: 3, 32, 32>}, {pipeline_mode = #tpu.pipeline_mode<synchronous>, transform_indices = @transform_5, window_bounds = array<i64: 3, 1, 32>}, {pipeline_mode = #tpu.pipeline_mode<synchronous>, transform_indices = @transform_6, window_bounds = array<i64: 32, 32>}, {pipeline_mode = #tpu.pipeline_mode<synchronous>, transform_indices = @transform_7, window_bounds = array<i64: 1, 32>}, {transform_indices = @transform_8, window_bounds = array<i64: 1, 8, 32>}, {transform_indices = @transform_9, window_bounds = array<i64: 1, 4, 8, 16>}]} {
    %c0_i32 = arith.constant 0 : i32
    %0 = arith.cmpi eq, %arg1, %c0_i32 : i32
    %1 = arith.extui %0 : i1 to i32
    %c0_i32_0 = arith.constant 0 : i32
    %2 = arith.cmpi ne, %1, %c0_i32_0 : i32
    scf.if %2 {
      %c0_36 = arith.constant 0 : index
      %c0_37 = arith.constant 0 : index
      %c0_38 = arith.constant 0 : index
      %59 = vector.load %arg4[%c0_36, %c0_37, %c0_38] : memref<1x16x32xf32, #tpu.memory_space<vmem>>, vector<1x16x32xf32>
      %60 = vector.shape_cast %59 : vector<1x16x32xf32> to vector<16x32xf32>
      %c1 = arith.constant 1 : index
      %c0_39 = arith.constant 0 : index
      %c0_40 = arith.constant 0 : index
      %61 = vector.load %arg6[%c1, %c0_39, %c0_40] : memref<3x32x32xf32, #tpu.memory_space<vmem>>, vector<1x32x32xf32>
      %62 = vector.shape_cast %61 : vector<1x32x32xf32> to vector<32x32xf32>
      %cst_41 = arith.constant dense<0.000000e+00> : vector<16x32xf32>
      %63 = tpu.matmul %60, %62, %cst_41 {dimension_numbers = #tpu.dot_dimension_numbers<[1], [0], [0], [1], [0, 0, 1, 1], [], []>} : vector<16x32xf32>, vector<32x32xf32>, vector<16x32xf32> -> vector<16x32xf32>
      %c1_42 = arith.constant 1 : index
      %c0_43 = arith.constant 0 : index
      %c0_44 = arith.constant 0 : index
      %64 = vector.load %arg7[%c1_42, %c0_43, %c0_44] : memref<3x1x32xf32, #tpu.memory_space<vmem>>, vector<1x1x32xf32>
      %65 = vector.shape_cast %64 : vector<1x1x32xf32> to vector<1x32xf32>
      %66 = vector.broadcast %65 : vector<1x32xf32> to vector<16x32xf32>
      %67 = arith.addf %63, %66 : vector<16x32xf32>
      %c0_45 = arith.constant 0 : index
      %c0_46 = arith.constant 0 : index
      %c0_47 = arith.constant 0 : index
      %68 = vector.load %arg5[%c0_45, %c0_46, %c0_47] : memref<1x16x32xf32, #tpu.memory_space<vmem>>, vector<1x16x32xf32>
      %69 = vector.shape_cast %68 : vector<1x16x32xf32> to vector<16x32xf32>
      %c2 = arith.constant 2 : index
      %c0_48 = arith.constant 0 : index
      %c0_49 = arith.constant 0 : index
      %70 = vector.load %arg6[%c2, %c0_48, %c0_49] : memref<3x32x32xf32, #tpu.memory_space<vmem>>, vector<1x32x32xf32>
      %71 = vector.shape_cast %70 : vector<1x32x32xf32> to vector<32x32xf32>
      %cst_50 = arith.constant dense<0.000000e+00> : vector<16x32xf32>
      %72 = tpu.matmul %69, %71, %cst_50 {dimension_numbers = #tpu.dot_dimension_numbers<[1], [0], [0], [1], [0, 0, 1, 1], [], []>} : vector<16x32xf32>, vector<32x32xf32>, vector<16x32xf32> -> vector<16x32xf32>
      %c2_51 = arith.constant 2 : index
      %c0_52 = arith.constant 0 : index
      %c0_53 = arith.constant 0 : index
      %73 = vector.load %arg7[%c2_51, %c0_52, %c0_53] : memref<3x1x32xf32, #tpu.memory_space<vmem>>, vector<1x1x32xf32>
      %74 = vector.shape_cast %73 : vector<1x1x32xf32> to vector<1x32xf32>
      %75 = vector.broadcast %74 : vector<1x32xf32> to vector<16x32xf32>
      %76 = arith.addf %72, %75 : vector<16x32xf32>
      %c0_54 = arith.constant 0 : index
      %c0_55 = arith.constant 0 : index
      %77 = vector.load %arg12[%c0_54, %c0_55] : memref<16x32xf32, #tpu.memory_space<vmem>>, vector<16x32xf32>
      tpu.vector_store %arg12[%c0_54, %c0_55], %67 {strides = array<i32>} : memref<16x32xf32, #tpu.memory_space<vmem>>, vector<16x32xf32>,
      %c0_56 = arith.constant 0 : index
      %c0_57 = arith.constant 0 : index
      %78 = vector.load %arg13[%c0_56, %c0_57] : memref<16x32xf32, #tpu.memory_space<vmem>>, vector<16x32xf32>
      tpu.vector_store %arg13[%c0_56, %c0_57], %76 {strides = array<i32>} : memref<16x32xf32, #tpu.memory_space<vmem>>, vector<16x32xf32>,
    } else {
    }
    %c0 = arith.constant 0 : index
    %c0_1 = arith.constant 0 : index
    %c0_2 = arith.constant 0 : index
    %3 = vector.load %arg3[%c0, %c0_1, %c0_2] : memref<1x8x32xf32, #tpu.memory_space<vmem>>, vector<1x8x32xf32>
    %4 = vector.shape_cast %3 : vector<1x8x32xf32> to vector<8x32xf32>
    %c0_3 = arith.constant 0 : index
    %c0_4 = arith.constant 0 : index
    %c0_5 = arith.constant 0 : index
    %5 = vector.load %arg6[%c0_3, %c0_4, %c0_5] : memref<3x32x32xf32, #tpu.memory_space<vmem>>, vector<1x32x32xf32>
    %6 = vector.shape_cast %5 : vector<1x32x32xf32> to vector<32x32xf32>
    %cst = arith.constant dense<0.000000e+00> : vector<8x32xf32>
    %7 = tpu.matmul %4, %6, %cst {dimension_numbers = #tpu.dot_dimension_numbers<[1], [0], [0], [1], [0, 0, 1, 1], [], []>} : vector<8x32xf32>, vector<32x32xf32>, vector<8x32xf32> -> vector<8x32xf32>
    %c0_6 = arith.constant 0 : index
    %c0_7 = arith.constant 0 : index
    %c0_8 = arith.constant 0 : index
    %8 = vector.load %arg7[%c0_6, %c0_7, %c0_8] : memref<3x1x32xf32, #tpu.memory_space<vmem>>, vector<1x1x32xf32>
    %9 = vector.shape_cast %8 : vector<1x1x32xf32> to vector<1x32xf32>
    %10 = vector.broadcast %9 : vector<1x32xf32> to vector<8x32xf32>
    %11 = arith.addf %7, %10 : vector<8x32xf32>
    %12 = vector.shape_cast %11 : vector<8x32xf32> to vector<8x4x8xf32>
    %13 = tpu.transpose %12, [1, 0, 2] : vector<8x4x8xf32> -> vector<4x8x8xf32>
    %c0_9 = arith.constant 0 : index
    %c0_10 = arith.constant 0 : index
    %14 = vector.load %arg12[%c0_9, %c0_10] : memref<16x32xf32, #tpu.memory_space<vmem>>, vector<16x32xf32>
    %15 = vector.shape_cast %14 : vector<16x32xf32> to vector<16x4x8xf32>
    %16 = tpu.transpose %15, [1, 0, 2] : vector<16x4x8xf32> -> vector<4x16x8xf32>
    %c0_11 = arith.constant 0 : index
    %c0_12 = arith.constant 0 : index
    %17 = vector.load %arg13[%c0_11, %c0_12] : memref<16x32xf32, #tpu.memory_space<vmem>>, vector<16x32xf32>
    %18 = vector.shape_cast %17 : vector<16x32xf32> to vector<16x4x8xf32>
    %19 = tpu.transpose %18, [1, 0, 2] : vector<16x4x8xf32> -> vector<4x16x8xf32>
    "tpu.trace_start"() <{level = 10 : i32, message = "hqd,hkd->hqk"}> : () -> ()
    %cst_13 = arith.constant dense<0.000000e+00> : vector<4x8x16xf32>
    %20 = tpu.matmul %13, %16, %cst_13 {dimension_numbers = #tpu.dot_dimension_numbers<[2], [2], [1], [1], [0, 0, 0, 1, 1, 1], [0], [0]>} : vector<4x8x8xf32>, vector<4x16x8xf32>, vector<4x8x16xf32> -> vector<4x8x16xf32>
    "tpu.trace_stop"() : () -> ()
    %c0_14 = arith.constant 0 : index
    %c0_15 = arith.constant 0 : index
    %c0_16 = arith.constant 0 : index
    %21 = vector.load %arg2[%c0_14, %c0_15, %c0_16] : memref<1x1x16xf32, #tpu.memory_space<vmem>>, vector<1x1x16xf32>
    %22 = vector.shape_cast %21 : vector<1x1x16xf32> to vector<1x16xf32>
    %cst_17 = arith.constant 0.000000e+00 : f32
    %23 = vector.broadcast %cst_17 : f32 to vector<1x16xf32>
    %24 = arith.cmpf ogt, %22, %23 : vector<1x16xf32>
    %cst_18 = arith.constant 0.000000e+00 : f32
    %cst_19 = arith.constant -1.000000e+30 : f32
    %25 = vector.broadcast %cst_18 : f32 to vector<1x16xf32>
    %26 = vector.broadcast %cst_19 : f32 to vector<1x16xf32>
    %27 = arith.select %24, %25, %26 : vector<1x16xi1>, vector<1x16xf32>
    %28 = vector.shape_cast %27 : vector<1x16xf32> to vector<1x1x16xf32>
    %29 = vector.broadcast %28 : vector<1x1x16xf32> to vector<4x8x16xf32>
    %30 = arith.addf %20, %29 : vector<4x8x16xf32>
    %cst_20 = arith.constant dense<0xFF800000> : vector<4x8xf32>
    %31 = vector.multi_reduction <maximumf>, %30, %cst_20 [2] : vector<4x8x16xf32> to vector<4x8xf32>
    %32 = vector.shape_cast %31 : vector<4x8xf32> to vector<4x8x1xf32>
    %33 = vector.broadcast %32 : vector<4x8x1xf32> to vector<4x8x16xf32>
    %34 = arith.subf %30, %33 : vector<4x8x16xf32>
    %35 = math.exp %34 : vector<4x8x16xf32>
    %cst_21 = arith.constant dense<0.000000e+00> : vector<4x8xf32>
    %36 = vector.multi_reduction <add>, %35, %cst_21 [2] : vector<4x8x16xf32> to vector<4x8xf32>
    %37 = vector.shape_cast %36 : vector<4x8xf32> to vector<4x8x1xf32>
    %38 = tpu.reciprocal %37 {approx = true} : vector<4x8x1xf32> -> vector<4x8x1xf32>
    %39 = arith.mulf %37, %38 : vector<4x8x1xf32>
    %cst_22 = arith.constant 2.000000e+00 : f32
    %40 = vector.broadcast %cst_22 : f32 to vector<4x8x1xf32>
    %41 = arith.subf %40, %39 : vector<4x8x1xf32>
    %42 = arith.mulf %38, %41 : vector<4x8x1xf32>
    %43 = vector.broadcast %42 : vector<4x8x1xf32> to vector<4x8x16xf32>
    %44 = arith.mulf %35, %43 : vector<4x8x16xf32>
    %c0_23 = arith.constant 0 : index
    %c0_24 = arith.constant 0 : index
    %c0_25 = arith.constant 0 : index
    %c0_26 = arith.constant 0 : index
    %45 = vector.load %arg11[%c0_23, %c0_24, %c0_25, %c0_26] : memref<1x4x8x16xf32, #tpu.memory_space<vmem>>, vector<1x4x8x16xf32>
    %46 = vector.shape_cast %45 : vector<1x4x8x16xf32> to vector<4x8x16xf32>
    %47 = vector.shape_cast %44 : vector<4x8x16xf32> to vector<1x4x8x16xf32>
    tpu.vector_store %arg11[%c0_23, %c0_24, %c0_25, %c0_26], %47 {strides = array<i32>} : memref<1x4x8x16xf32, #tpu.memory_space<vmem>>, vector<1x4x8x16xf32>,
    "tpu.trace_start"() <{level = 10 : i32, message = "hqk,hkd->hqd"}> : () -> ()
    %cst_27 = arith.constant dense<0.000000e+00> : vector<4x8x8xf32>
    %48 = tpu.matmul %44, %19, %cst_27 {dimension_numbers = #tpu.dot_dimension_numbers<[2], [1], [1], [2], [0, 0, 0, 1, 1, 2], [0], [0]>} : vector<4x8x16xf32>, vector<4x16x8xf32>, vector<4x8x8xf32> -> vector<4x8x8xf32>
    "tpu.trace_stop"() : () -> ()
    %49 = tpu.transpose %48, [1, 0, 2] : vector<4x8x8xf32> -> vector<8x4x8xf32>
    %50 = vector.shape_cast %49 : vector<8x4x8xf32> to vector<8x32xf32>
    %c0_28 = arith.constant 0 : index
    %c0_29 = arith.constant 0 : index
    %51 = vector.load %arg8[%c0_28, %c0_29] : memref<32x32xf32, #tpu.memory_space<vmem>>, vector<32x32xf32>
    %cst_30 = arith.constant dense<0.000000e+00> : vector<8x32xf32>
    %52 = tpu.matmul %50, %51, %cst_30 {dimension_numbers = #tpu.dot_dimension_numbers<[1], [0], [0], [1], [0, 0, 1, 1], [], []>} : vector<8x32xf32>, vector<32x32xf32>, vector<8x32xf32> -> vector<8x32xf32>
    %c0_31 = arith.constant 0 : index
    %c0_32 = arith.constant 0 : index
    %53 = vector.load %arg9[%c0_31, %c0_32] : memref<1x32xf32, #tpu.memory_space<vmem>>, vector<1x32xf32>
    %54 = vector.broadcast %53 : vector<1x32xf32> to vector<8x32xf32>
    %55 = arith.addf %52, %54 : vector<8x32xf32>
    %c0_33 = arith.constant 0 : index
    %c0_34 = arith.constant 0 : index
    %c0_35 = arith.constant 0 : index
    %56 = vector.load %arg10[%c0_33, %c0_34, %c0_35] : memref<1x8x32xf32, #tpu.memory_space<vmem>>, vector<1x8x32xf32>
    %57 = vector.shape_cast %56 : vector<1x8x32xf32> to vector<8x32xf32>
    %58 = vector.shape_cast %55 : vector<8x32xf32> to vector<1x8x32xf32>
    tpu.vector_store %arg10[%c0_33, %c0_34, %c0_35], %58 {strides = array<i32>} : memref<1x8x32xf32, #tpu.memory_space<vmem>>, vector<1x8x32xf32>,
    return
  }
  func.func @transform_0(%arg0: i32, %arg1: i32) -> (i32, i32, i32) {
    %c0_i32 = arith.constant 0 : i32
    %c0_i32_0 = arith.constant 0 : i32
    %c0_i32_1 = arith.constant 0 : i32
    return %arg0, %c0_i32, %c0_i32_0 : i32, i32, i32
  }
  func.func @transform_1(%arg0: i32, %arg1: i32) -> (i32, i32, i32) {
    %c0_i32 = arith.constant 0 : i32
    %c0_i32_0 = arith.constant 0 : i32
    return %arg0, %arg1, %c0_i32 : i32, i32, i32
  }
  func.func @transform_2(%arg0: i32, %arg1: i32) -> (i32, i32, i32) {
    %c0_i32 = arith.constant 0 : i32
    %c0_i32_0 = arith.constant 0 : i32
    %c0_i32_1 = arith.constant 0 : i32
    return %arg0, %c0_i32, %c0_i32_0 : i32, i32, i32
  }
  func.func @transform_3(%arg0: i32, %arg1: i32) -> (i32, i32, i32) {
    %c0_i32 = arith.constant 0 : i32
    %c0_i32_0 = arith.constant 0 : i32
    %c0_i32_1 = arith.constant 0 : i32
    return %arg0, %c0_i32, %c0_i32_0 : i32, i32, i32
  }
  func.func @transform_4(%arg0: i32, %arg1: i32) -> (i32, i32, i32) {
    %c0_i32 = arith.constant 0 : i32
    %c0_i32_0 = arith.constant 0 : i32
    %c0_i32_1 = arith.constant 0 : i32
    %c0_i32_2 = arith.constant 0 : i32
    return %c0_i32, %c0_i32_0, %c0_i32_1 : i32, i32, i32
  }
  func.func @transform_5(%arg0: i32, %arg1: i32) -> (i32, i32, i32) {
    %c0_i32 = arith.constant 0 : i32
    %c0_i32_0 = arith.constant 0 : i32
    %c0_i32_1 = arith.constant 0 : i32
    %c0_i32_2 = arith.constant 0 : i32
    return %c0_i32, %c0_i32_0, %c0_i32_1 : i32, i32, i32
  }
  func.func @transform_6(%arg0: i32, %arg1: i32) -> (i32, i32) {
    %c0_i32 = arith.constant 0 : i32
    %c0_i32_0 = arith.constant 0 : i32
    %c0_i32_1 = arith.constant 0 : i32
    return %c0_i32, %c0_i32_0 : i32, i32
  }
  func.func @transform_7(%arg0: i32, %arg1: i32) -> (i32, i32) {
    %c0_i32 = arith.constant 0 : i32
    %c0_i32_0 = arith.constant 0 : i32
    %c0_i32_1 = arith.constant 0 : i32
    return %c0_i32, %c0_i32_0 : i32, i32
  }
  func.func @transform_8(%arg0: i32, %arg1: i32) -> (i32, i32, i32) {
    %c0_i32 = arith.constant 0 : i32
    %c0_i32_0 = arith.constant 0 : i32
    return %arg0, %arg1, %c0_i32 : i32, i32, i32
  }
  func.func @transform_9(%arg0: i32, %arg1: i32) -> (i32, i32, i32, i32) {
    %c0_i32 = arith.constant 0 : i32
    %c0_i32_0 = arith.constant 0 : i32
    %c0_i32_1 = arith.constant 0 : i32
    return %arg0, %c0_i32, %arg1, %c0_i32_0 : i32, i32, i32, i32
  }
}

</mosaic_0001>

<bundles_post_ra>
// kernel: tpu_custom_call.1
= control target key start
LH: loop header
LB: loop body
LE: loop exit
PB: predicated region body
PF: predicated region fallthrough
CT: control target
= control target key end

     0   :  { %s4402_s0 = inlined_call_operand.hbm [shape: f32[2,1,16], index: 0, kind: input, shape index: {}]   ;;  %s4403_s1 = inlined_call_operand.hbm [shape: f32[2,16,32], index: 1, kind: input, shape index: {}]   ;;  %s4404_s2 = inlined_call_operand.hbm [shape: f32[2,16,32], index: 2, kind: input, shape index: {}]   ;;  %s4405_s3 = inlined_call_operand.hbm [shape: f32[2,16,32], index: 3, kind: input, shape index: {}]   ;;  %s4406_s4 = inlined_call_operand.hbm [shape: f32[3,32,32], index: 4, kind: input, shape index: {}]   ;;  %s4407_s5 = inlined_call_operand.hbm [shape: f32[3,1,32], index: 5, kind: input, shape index: {}]   ;;  %s4408_s6 = inlined_call_operand.hbm [shape: f32[32,32], index: 6, kind: input, shape index: {}]   ;;  %s4409_s7 = inlined_call_operand.hbm [shape: f32[1,32], index: 7, kind: input, shape index: {}]   ;;  %s4410_s8 = inlined_call_operand.hbm [shape: f32[2,16,32], index: 8, kind: output, shape index: {0}]   ;;  %s4411_s9 = inlined_call_operand.hbm [shape: f32[2,4,16,16], index: 9, kind: output, shape index: {1}]  }
   0x1   :  { %4445 = sst [smem:[#allocation35_spill]] %s4402_s0 }
   0x2   :  { %4446 = sst [smem:[#allocation36_spill]] %s4403_s1 }
   0x3   :  { %4447 = sst [smem:[#allocation37_spill]] %s4404_s2 }
   0x4   :  { %4448 = sst [smem:[#allocation38_spill]] %s4405_s3 }
   0x5   :  { %4449 = sst [smem:[#allocation39_spill]] %s4406_s4 }
   0x6   :  { %4450 = sst [smem:[#allocation40_spill]] %s4407_s5 }
   0x7   :  { %4451 = sst [smem:[#allocation41_spill]] %s4408_s6 }
   0x8   :  { %4452 = sst [smem:[#allocation42_spill]] %s4409_s7 }
   0x9   :  { %4453 = sst [smem:[#allocation43_spill]] %s4410_s8 }
   0xa   :  { %4454 = sst [smem:[#allocation44_spill]] %s4411_s9 }
   0xb   :  { %15 = vsyncpa [#allocation5], 0 }
   0xc   :  { %16 = vsyncpa [#allocation8], 0 }
   0xd   :  { %18 = vsyncpa [#allocation8 + $0x1], 0 }
   0xe   :  { %19 = vsyncpa [#allocation11], 0 }
   0xf   :  { %20 = vsyncpa [#allocation14], 0 }
  0x10   :  { %21 = vsyncpa [#allocation17], 0 }
  0x11   :  { %22 = vsyncpa [#allocation6], 0 }
  0x12   :  { %24 = vsyncpa [#allocation6 + $0x1], 0 }
  0x13   :  { %25 = vsyncpa [#allocation20], 0 }
  0x14   :  { %27 = vsyncpa [#allocation20 + $0x1], 0  ;;  %s3634_s30 = smov 0   ;;  %s3636_s10 = smov 0  }
  0x15   :  { %s3638_s11 = smov 0   ;;  %s3640_s12 = smov 0  }
  0x16   :  { %s3642_s13 = smov 0   ;;  %s3644_s14 = smov 0  }
  0x17   :  { %s3646_s15 = smov 0   ;;  %s3648_s16 = smov 0  }
  0x18   :  { %s3650_s17 = smov 0   ;;  %s3652_s18 = smov 0  }
  0x19   :  { %s3654_s19 = smov 0  }
  0x1a LB: > { %4455 = sst [smem:[#allocation30_spill]] %s3530_s13  ;;  %s3688_s20 = sadd.s32 4294967295, %s3554_s19   ;;  %s3554_s19 = sphi %s3654_s19, %s33_s19   ;;  %s3550_s18 = sphi %s3652_s18, %s4522_s18   ;;  %s3546_s17 = sphi %s3650_s17, %s4521_s17   ;;  %s3542_s16 = sphi %s3648_s16, %s4520_s16   ;;  %s3538_s15 = sphi %s3646_s15, %s4519_s15   ;;  %s3534_s14 = sphi %s3644_s14, %s4518_s14   ;;  %s3530_s13 = sphi %s3642_s13, %s4517_s13   ;;  %s3526_s12 = sphi %s3640_s12, %s4513_s12   ;;  %s3522_s11 = sphi %s3638_s11, %s4516_s11   ;;  %s3518_s10 = sphi %s3636_s10, %s4515_s10   ;;  %s3514_s30 = sphi %s3634_s30, %s4514_s30  }
  0x1b   : > { %4456 = sst [smem:[#allocation31_spill]] %s3538_s15  ;;  %p65_p0 = scmp.ne.s32.totalorder %s3530_s13, %s3526_s12 }
  0x1c   : > { %4457 = sst [smem:[#allocation32_spill]] %s3688_s20  ;;  %p4419_p1 = scmp.eq.s32.totalorder %s3688_s20, 0 }
  0x1d   : > { %p2671_p2 = scmp.ge.s32.totalorder %s3554_s19, 1  ;;  %p296_p3 = scmp.lt.s32.totalorder %s3554_s19, 5 }
  0x1e   : > { %s2740_s21 = sshll.u32 %s3542_s16, 8  ;;  %p3697_p4 = por %p4419_p1, %p65_p0 }
  0x1f   : > { %s4460_s2 = sld [smem:[#allocation37_spill]]  ;;  %p3706_p5 = pnand %p2671_p2, %p296_p3 }
  0x20   : > { %s4458_s22 = scalar_select %p3697_p4, 1, 0 }
  0x21   : > { %s4461_s26 = scalar_select %p3706_p5, 1, 0 }
  0x22   : > { %4459 = sst [smem:[#allocation33_spill]] %s4458_s22  ;;  %s3556_s27 = smov [#allocation9]  }
  0x23   : > { %4462 = sst [smem:[#allocation34_spill]] %s4461_s26  ;;  %s324_s28 = sshll.u32 %s3556_s27, 4  ;;  %s3712_s28 = int_to_ptr.vmem [resolvable:$true] %s324_s28 }
  0x24   : > { %p4418_p6 = pneg %p3706_p5  ;;  %s4464_s3 = sld [smem:[#allocation38_spill]] }
  0x25   : > { %s3704_s25 = scalar_lea.hbm %s4460_s2, %s2740_s21  ;;  %s3557_s13 = smov [#allocation10]  }
  0x26   : > { %p3719_p7 = pnand %p4418_p6, %p3697_p4  ;;  %s3728_s27 = sshll.u32 %s3557_s13, 4  ;;  %s341_s27 = int_to_ptr.vmem [resolvable:$true] %s3728_s27 }
  0x27   : > { %s3144_s8 = scalar_lea.hbm %s3704_s25, 256  ;;  %s3149_s12 = scalar_lea.hbm %s4460_s2, 512 }
  0x28   : > { %s4463_s29 = scalar_select %p3719_p7, 1, 0 }
  0x29   : > { %p3145_p8 = scmp.ne.s32.totalorder %s3704_s25, %s3144_s8  ;;  %p3734_p9 = pneg %p3719_p7 }
  0x2a   : > { %s3726_s24 = scalar_lea.hbm %s4464_s3, %s2740_s21  ;;  %p3150_p12 = scmp.lt.u32.totalorder %s3704_s25, %s4460_s2 }
  0x2b   : > { %s4465_s9 = scalar_select %p3734_p9, 1, 0 }
  0x2c   : > { %p3147_p10 = pnand %p3734_p9, %p3145_p8  ;;  %p3151_p13 = scmp.lt.u32.totalorder %s3149_s12, %s3144_s8 }
  0x2d   : > { %p3153_p2 = scmp.lt.u32.totalorder %s3144_s8, %s3704_s25 }
  0x2e   : > { %p3148_p11 = pneg %p3147_p10  ;;  %p3152_p0 = por %p3151_p13, %p3150_p12 }
  0x30   : > { %p3154_p3 = por %p3153_p2, %p3152_p0 }
  0x32   : > { %p3155_p6 = pnand %p3154_p3, %p3148_p11 }
  0x34   : > { %3158 = shalt.err (!%p3155_p6)
}
  0x35   : > { %s3159_s13 = scalar_lea.vmem %s3712_s28, 256  ;;  %p3167_p4 = scmp.lt.s32.totalorder %s3712_s28, %s3712_s28 }
  0x36   : > { %p3160_p8 = scmp.ne.s32.totalorder %s3712_s28, %s3159_s13  ;;  %p3168_p5 = scmp.lt.s32.totalorder %s3159_s13, %s3159_s13 }
  0x38   : > { %p3162_p10 = pnand %p3160_p8, %p3734_p9  ;;  %p3169_p7 = por %p3168_p5, %p3167_p4 }
  0x3a   : > { %p3163_p1 = pneg %p3162_p10 }
  0x3c   : > { %p3170_p12 = pnand %p3169_p7, %p3163_p1 }
  0x3e   : > { %3173 = shalt.err (!%p3170_p12)
}
  0x3f   : > { %s4430_s15 = smov 128   ;;  %s4432_s8 = smov 8  }
  0x40   : > { %p4466_p6 = scmp.ne.s32.totalorder %s4463_s29, 0  ;;  %p4467_p1 = scmp.eq.s32.totalorder %s3688_s20, 0 }
  0x41   : > { %p4468_p4 = scmp.ne.s32.totalorder %s4461_s26, 0  ;;  %s3174_s12 = scalar_lea.hbm %s3726_s24, 256 }
  0x42   : > { %2978 = dma.hbm_to_vmem [thread:$0]  (!%p4466_p6), %s3704_s25, 256, %s3712_s28, [#allocation8], %s4430_s15, %s4430_s15, %s4432_s8  }
  0x43   : > { %p4469_p5 = pneg %p4468_p4  ;;  %p3175_p11 = scmp.ne.s32.totalorder %s3726_s24, %s3174_s12 }
  0x44   : > { %s3179_s13 = scalar_lea.hbm %s4464_s3, 512  ;;  %p3180_p2 = scmp.lt.u32.totalorder %s3726_s24, %s4464_s3 }
  0x45   : > { %p3767_p7 = pnand %p4469_p5, %p4467_p1  ;;  %p3177_p13 = pnand %p3175_p11, %p3734_p9 }
  0x46   : > { %p3181_p3 = scmp.lt.u32.totalorder %s3179_s13, %s3174_s12  ;;  %p3183_p10 = scmp.lt.u32.totalorder %s3174_s12, %s3726_s24 }
  0x47   : > { %s4470_s22 = scalar_select %p3767_p7, 1, 0 }
  0x48   : > { %p3178_p0 = pneg %p3177_p13  ;;  %p3182_p8 = por %p3181_p3, %p3180_p2 }
  0x4a   : > { %p3184_p12 = por %p3183_p10, %p3182_p8 }
  0x4c   : > { %p3185_p1 = pnand %p3184_p12, %p3178_p0 }
  0x4e   : > { %3188 = shalt.err (!%p3185_p1)
}
  0x4f   : > { %s3189_s25 = scalar_lea.vmem %s341_s27, 256  ;;  %p3197_p4 = scmp.lt.s32.totalorder %s341_s27, %s341_s27 }
  0x50   : > { %p3190_p5 = scmp.ne.s32.totalorder %s341_s27, %s3189_s25  ;;  %p3198_p7 = scmp.lt.s32.totalorder %s3189_s25, %s3189_s25 }
  0x52   : > { %p3192_p11 = pnand %p3190_p5, %p3734_p9  ;;  %p3199_p6 = por %p3198_p7, %p3197_p4 }
  0x54   : > { %p3193_p13 = pneg %p3192_p11 }
  0x56   : > { %p3200_p2 = pnand %p3199_p6, %p3193_p13 }
  0x58   : > { %3203 = shalt.err (!%p3200_p2)
}
  0x59   : > { %p4471_p3 = scmp.ne.s32.totalorder %s4463_s29, 0  ;;  %s3560_s1 = smov [#allocation13]  }
  0x5a   : > { %s366_s2 = sshll.u32 %s3560_s1, 4  ;;  %s4472_s5 = sld [smem:[#allocation40_spill]]  ;;  %s367_s2 = int_to_ptr.vmem [resolvable:$true] %s366_s2 }
  0x5b   : > { %2981 = dma.hbm_to_vmem [thread:$0]  (!%p4471_p3), %s3726_s24, 256, %s341_s27, [#allocation11], %s4430_s15, %s4430_s15, %s4432_s8  }
  0x5c   : > { %p4473_p4 = scmp.ne.s32.totalorder %s4470_s22, 0 }
  0x5e   : > { %p3799_p7 = pneg %p4473_p4 }
  0x60   : > { %s3204_s21 = scalar_lea.hbm %s4472_s5, 48 }
  0x61   : > { %p3205_p6 = scmp.ne.s32.totalorder %s4472_s5, %s3204_s21  ;;  %p3211_p10 = scmp.lt.u32.totalorder %s3204_s21, %s4472_s5 }
  0x62   : > { %s4474_s25 = scalar_select %p3799_p7, 1, 0 }
  0x63   : > { %p3207_p0 = pnand %p3799_p7, %p3205_p6 }
  0x65   : > { %p3208_p8 = pneg %p3207_p0 }
  0x67   : > { %p3213_p12 = pnand %p3211_p10, %p3208_p8 }
  0x69   : > { %3216 = shalt.err (!%p3213_p12)
}
  0x6a   : > { %s3217_s1 = scalar_lea.vmem %s367_s2, 48  ;;  %s3224_s28 = scalar_lea.vmem %s367_s2, 64 }
  0x6b   : > { %p3218_p1 = scmp.ne.s32.totalorder %s367_s2, %s3217_s1  ;;  %p3225_p13 = scmp.lt.s32.totalorder %s367_s2, %s367_s2 }
  0x6c   : > { %p3226_p2 = scmp.lt.s32.totalorder %s3224_s28, %s3217_s1 }
  0x6d   : > { %p3220_p5 = pnand %p3218_p1, %p3799_p7 }
  0x6e   : > { %p3227_p3 = por %p3226_p2, %p3225_p13 }
  0x6f   : > { %p3221_p11 = pneg %p3220_p5 }
  0x71   : > { %p3228_p9 = pnand %p3227_p3, %p3221_p11 }
  0x73   : > { %3231 = shalt.err (!%p3228_p9)
}
  0x74   : > { %s3561_s12 = smov 16   ;;  %s3562_s23 = smov 1  }
  0x75   : > { %2987 = dma.hbm_to_vmem [thread:$0]  (!%p4473_p4), %s4472_s5, 48, %s367_s2, [#allocation14], %s3561_s12, %s3561_s12, %s3562_s23  }
  0x76   : > { %s2672_s24 = sshll.u32 %s3542_s16, 4  ;;  %s4475_s0 = sld [smem:[#allocation35_spill]] }
  0x77   : > { %s3563_s1 = smov [#allocation4]   ;;  %s3564_s3 = smov [#allocation12]  }
  0x78   : > { %s311_s28 = sshll.u32 %s3563_s1, 4  ;;  %s353_s26 = sshll.u32 %s3564_s3, 4  ;;  %s312_s28 = int_to_ptr.vmem [resolvable:$true] %s311_s28  ;;  %s3821_s26 = int_to_ptr.vmem [resolvable:$true] %s353_s26 }
  0x79   : > { %p4476_p3 = scmp.ne.s32.totalorder %s4465_s9, 0 }
  0x7c   : > { %s3819_s8 = scalar_lea.hbm %s4475_s0, %s2672_s24  ;;  %s3237_s12 = scalar_lea.hbm %s4475_s0, 32 }
  0x7d   : > { %s3232_s20 = scalar_lea.hbm %s3819_s8, 16  ;;  %p3238_p8 = scmp.lt.u32.totalorder %s3819_s8, %s4475_s0 }
  0x7e   : > { %p3233_p9 = scmp.ne.s32.totalorder %s3819_s8, %s3232_s20  ;;  %p3239_p10 = scmp.lt.u32.totalorder %s3237_s12, %s3232_s20 }
  0x7f   : > { %p3241_p1 = scmp.lt.u32.totalorder %s3232_s20, %s3819_s8 }
  0x80   : > { %p3235_p6 = pnand %p3233_p9, %p4476_p3  ;;  %p3240_p12 = por %p3239_p10, %p3238_p8 }
  0x82   : > { %p3236_p0 = pneg %p3235_p6  ;;  %p3242_p5 = por %p3241_p1, %p3240_p12 }
  0x84   : > { %p3243_p11 = pnand %p3242_p5, %p3236_p0 }
  0x86   : > { %3246 = shalt.err (!%p3243_p11)
}
  0x87   : > { %s3247_s3 = scalar_lea.vmem %s312_s28, 16  ;;  %s3254_s13 = scalar_lea.vmem %s312_s28, 32 }
  0x88   : > { %p3248_p13 = scmp.ne.s32.totalorder %s312_s28, %s3247_s3  ;;  %p3255_p6 = scmp.lt.s32.totalorder %s312_s28, %s312_s28 }
  0x89   : > { %p3256_p4 = scmp.lt.s32.totalorder %s3254_s13, %s3247_s3 }
  0x8a   : > { %p3250_p2 = pnand %p3248_p13, %p4476_p3 }
  0x8b   : > { %p3257_p7 = por %p3256_p4, %p3255_p6 }
  0x8c   : > { %p3251_p9 = pneg %p3250_p2 }
  0x8e   : > { %p3258_p8 = pnand %p3257_p7, %p3251_p9 }
  0x90   : > { %3261 = shalt.err (!%p3258_p8)
}
  0x91   : > { %p4477_p10 = scmp.ne.s32.totalorder %s4463_s29, 0  ;;  %s4478_s4 = sld [smem:[#allocation39_spill]] }
  0x92   : > { %p4479_p0 = scmp.ne.s32.totalorder %s4474_s25, 0 }
  0x93   : > { %2975 = dma.hbm_to_vmem [thread:$0]  (!%p4477_p10), %s3819_s8, 16, %s312_s28, [#allocation5]  }
  0x97   : > { %s3262_s27 = scalar_lea.hbm %s4478_s4, 1536 }
  0x98   : > { %p3263_p3 = scmp.ne.s32.totalorder %s4478_s4, %s3262_s27  ;;  %p3269_p4 = scmp.lt.u32.totalorder %s3262_s27, %s4478_s4 }
  0x9a   : > { %p3265_p12 = pnand %p3263_p3, %p4479_p0 }
  0x9c   : > { %p3266_p1 = pneg %p3265_p12 }
  0x9e   : > { %p3271_p7 = pnand %p3269_p4, %p3266_p1 }
  0xa0   : > { %3274 = shalt.err (!%p3271_p7)
}
  0xa1   : > { %s3275_s29 = scalar_lea.vmem %s3821_s26, 1536  ;;  %p3283_p2 = scmp.lt.s32.totalorder %s3821_s26, %s3821_s26 }
  0xa2   : > { %p3276_p5 = scmp.ne.s32.totalorder %s3821_s26, %s3275_s29  ;;  %p3284_p9 = scmp.lt.s32.totalorder %s3275_s29, %s3275_s29 }
  0xa4   : > { %p3278_p11 = pnand %p3276_p5, %p4479_p0  ;;  %p3285_p6 = por %p3284_p9, %p3283_p2 }
  0xa6   : > { %p3279_p13 = pneg %p3278_p11 }
  0xa8   : > { %p3286_p8 = pnand %p3285_p6, %p3279_p13 }
  0xaa   : > { %3289 = shalt.err (!%p3286_p8)
}
  0xab   : > { %p4480_p10 = scmp.ne.s32.totalorder %s4470_s22, 0  ;;  %s4481_s8 = smov 8  }
  0xac   : > { %s4482_s28 = smov 128   ;;  %s3565_s21 = smov [#allocation15]  }
  0xad   : > { %2984 = dma.hbm_to_vmem [thread:$0]  (!%p4480_p10), %s4478_s4, 1536, %s3821_s26, [#allocation11], %s4482_s28, %s4482_s28, %s4481_s8  }
  0xae   : > { %s379_s3 = sshll.u32 %s3565_s21, 4  ;;  %s3566_s13 = smov [#allocation16]   ;;  %s380_s3 = int_to_ptr.vmem [resolvable:$true] %s379_s3 }
  0xaf   : > { %s393_s20 = sshll.u32 %s3566_s13, 4  ;;  %s4483_s6 = sld [smem:[#allocation41_spill]]  ;;  %s3866_s20 = int_to_ptr.vmem [resolvable:$true] %s393_s20 }
  0xb5   : > { %s3290_s1 = scalar_lea.hbm %s4483_s6, 512 }
  0xb6   : > { %p3291_p3 = scmp.ne.s32.totalorder %s4483_s6, %s3290_s1  ;;  %p3297_p4 = scmp.lt.u32.totalorder %s3290_s1, %s4483_s6 }
  0xb8   : > { %p3293_p12 = pnand %p3291_p3, %p4479_p0 }
  0xba   : > { %p3294_p1 = pneg %p3293_p12 }
  0xbc   : > { %p3299_p7 = pnand %p3297_p4, %p3294_p1 }
  0xbe   : > { %3302 = shalt.err (!%p3299_p7)
}
  0xbf   : > { %s3303_s29 = scalar_lea.vmem %s380_s3, 512  ;;  %p3311_p2 = scmp.lt.s32.totalorder %s380_s3, %s380_s3 }
  0xc0   : > { %p3304_p5 = scmp.ne.s32.totalorder %s380_s3, %s3303_s29  ;;  %p3312_p9 = scmp.lt.s32.totalorder %s3303_s29, %s3303_s29 }
  0xc2   : > { %p3306_p11 = pnand %p3304_p5, %p4479_p0  ;;  %p3313_p6 = por %p3312_p9, %p3311_p2 }
  0xc4   : > { %p3307_p13 = pneg %p3306_p11 }
  0xc6   : > { %p3314_p8 = pnand %p3313_p6, %p3307_p13 }
  0xc8   : > { %3317 = shalt.err (!%p3314_p8)
}
  0xc9   : > { %2990 = dma.hbm_to_vmem [thread:$0]  (!%p4480_p10), %s4483_s6, 512, %s380_s3, [#allocation14], %s4482_s28, %s4482_s28, %s4481_s8  }
  0xca   : > { %s4484_s7 = sld [smem:[#allocation42_spill]] }
  0xd0   : > { %s3318_s24 = scalar_lea.hbm %s4484_s7, 16 }
  0xd1   : > { %p3319_p3 = scmp.ne.s32.totalorder %s4484_s7, %s3318_s24  ;;  %p3325_p4 = scmp.lt.u32.totalorder %s3318_s24, %s4484_s7 }
  0xd3   : > { %p3321_p12 = pnand %p3319_p3, %p4479_p0 }
  0xd5   : > { %p3322_p1 = pneg %p3321_p12 }
  0xd7   : > { %p3327_p7 = pnand %p3325_p4, %p3322_p1 }
  0xd9   : > { %3330 = shalt.err (!%p3327_p7)
}
  0xda   : > { %s3331_s8 = scalar_lea.vmem %s3866_s20, 16  ;;  %s3338_s28 = scalar_lea.vmem %s3866_s20, 32 }
  0xdb   : > { %p3332_p5 = scmp.ne.s32.totalorder %s3866_s20, %s3331_s8  ;;  %p3339_p2 = scmp.lt.s32.totalorder %s3866_s20, %s3866_s20 }
  0xdc   : > { %p3340_p9 = scmp.lt.s32.totalorder %s3338_s28, %s3331_s8 }
  0xdd   : > { %p3334_p11 = pnand %p3332_p5, %p4479_p0 }
  0xde   : > { %p3341_p6 = por %p3340_p9, %p3339_p2 }
  0xdf   : > { %p3335_p13 = pneg %p3334_p11 }
  0xe1   : > { %p3342_p8 = pnand %p3341_p6, %p3335_p13 }
  0xe3   : > { %3345 = shalt.err (!%p3342_p8)
}
  0xe4   : > { %s4485_s25 = sld [smem:[#allocation32_spill]]  ;;  %s2670_s26 = sadd.s32 4294967294, %s3554_s19  }
  0xe5   : > { %2993 = dma.hbm_to_vmem [thread:$0]  (!%p4480_p10), %s4484_s7, 16, %s3866_s20, [#allocation17]  }
  0xe6   : > { %s42_s22 = sadd.s32 1, %s3546_s17  ;;  %s45_s29 = sadd.s32 1, %s3550_s18 }
  0xe7   : > { %p43_p0 = scmp.ge.s32.totalorder %s42_s22, 2  ;;  %s52_s12 = sadd.s32 1, %s3534_s14 }
  0xe8   : > { %s80_s23 = sadd.s32 1, %s3522_s11  ;;  %p87_p3 = scmp.ne.s32.totalorder %s3522_s11, %s3518_s10 }
  0xe9   : > { %s4524_s22 = smov (%p43_p0, %s42_s22), 0  ;;  %s4526_s29 = smov (!%p43_p0, %s45_s29), %s3550_s18 }
  0xea   : > { %s76_s21 = ssub.s32 %s3546_s17, %s4524_s22  ;;  %p47_p10 = scmp.ge.s32.totalorder %s4526_s29, 2 }
  0xeb   : > { %p88_p12 = scmp.eq.s32.totalorder %s3554_s19, 0  ;;  %p93_p1 = scmp.ne.s32.totalorder %s3518_s10, %s3514_s30 }
  0xec   : > { %p255_p4 = scmp.eq.s32.totalorder %s4485_s25, 3  ;;  %s4528_s29 = smov (%p47_p10, %s4526_s29), 0 }
  0xed   : > { %p3931_p7 = por %p88_p12, %p87_p3  ;;  %p4487_p5 = scmp.eq.s32.totalorder %s4485_s25, 0 }
  0xee   : > { %s49_s24 = ssub.s32 %s3550_s18, %s4528_s29  ;;  %p3946_p13 = por %p255_p4, %p87_p3 }
  0xef   : > { %p3940_p11 = por %p93_p1, %p4487_p5  ;;  %p50_p2 = scmp.eq.s32.totalorder %s49_s24, 0 }
  0xf0   : > { %s4489_s27 = scalar_select %p3946_p13, 1, 0 }
  0xf1   : > { %s77_s1 = sor.u32 %s76_s21, %s49_s24  ;;  %p261_p6 = scmp.eq.s32.totalorder %s2670_s26, 3 }
  0xf2   : > { %p78_p9 = scmp.eq.s32.totalorder %s77_s1, 0  ;;  %p3009_p0 = scmp.lt.s32.totalorder %s3554_s19, 4 }
  0xf3   : > { %s3951_s2 = scalar_select %p50_p2, %s3534_s14, %s52_s12  }
  0xf4   : > { %s3954_s9 = scalar_select %p78_p9, %s3522_s11, %s80_s23  }
  0xf5   : > { %p3959_p8 = por %p261_p6, %p93_p1  ;;  %s404_s28 = sand.u32 1, %s3554_s19  }
  0xf6   : > { %s406_s3 = sand.u32 1, %s3522_s11   ;;  %s2683_s25 = sshll.u32 %s3550_s18, 1 }
  0xf7   : > { %s4490_s8 = scalar_select %p3959_p8, 1, 0 }
  0xf8   : > { %s2682_s15 = sshll.u32 %s406_s3, 3  ;;  %s413_s0 = sadd.s32 %s3546_s17, %s2683_s25 }
  0xf9   : > { %s408_s4 = scalar_lea.vmem [#allocation7], %s2682_s15  ;;  %s2684_s24 = sshll.u32 %s413_s0, 7 }
  0xfa   : > { %s417_s21 = sshll.u32 %s408_s4, 4  ;;  %s4491_s23 = sld [smem:[#allocation36_spill]]  ;;  %s3968_s21 = int_to_ptr.vmem [resolvable:$true] %s417_s21 }
  0xfb   : > { %p3977_p3 = pnand %p3009_p0, %p3931_p7  ;;  %s405_s4 = scalar_lea.sflag [#allocation8], %s404_s28 }
  0xfd   : > { %p3348_p12 = pneg %p3977_p3 }
 0x100   : > { %s3973_s1 = scalar_lea.hbm %s4491_s23, %s2684_s24  ;;  %s3351_s15 = scalar_lea.hbm %s4491_s23, 512 }
 0x101   : > { %s3346_s0 = scalar_lea.hbm %s3973_s1, 128  ;;  %p3352_p7 = scmp.lt.u32.totalorder %s3973_s1, %s4491_s23 }
 0x102   : > { %p3347_p10 = scmp.ne.s32.totalorder %s3973_s1, %s3346_s0  ;;  %p3353_p5 = scmp.lt.u32.totalorder %s3351_s15, %s3346_s0 }
 0x103   : > { %p3355_p9 = scmp.lt.u32.totalorder %s3346_s0, %s3973_s1 }
 0x104   : > { %p3349_p1 = pnand %p3348_p12, %p3347_p10  ;;  %p3354_p2 = por %p3353_p5, %p3352_p7 }
 0x106   : > { %p3350_p4 = pneg %p3349_p1  ;;  %p3356_p6 = por %p3355_p9, %p3354_p2 }
 0x108   : > { %p3357_p0 = pnand %p3356_p6, %p3350_p4 }
 0x10a   : > { %3360 = shalt.err (!%p3357_p0)
}
 0x10b   : > { %s3361_s28 = scalar_lea.vmem %s3968_s21, 128  ;;  %s3567_s26 = smov [#allocation7]  }
 0x10c   : > { %p3362_p10 = scmp.ne.s32.totalorder %s3968_s21, %s3361_s28  ;;  %s3366_s12 = sshll.u32 %s3567_s26, 4  ;;  %s3367_s12 = int_to_ptr.vmem [resolvable:$false] %s3366_s12 }
 0x10d   : > { %s3368_s20 = scalar_lea.vmem %s3367_s12, 256  ;;  %p3369_p13 = scmp.lt.s32.totalorder %s3968_s21, %s3367_s12 }
 0x10e   : > { %p3364_p1 = pnand %p3362_p10, %p3348_p12  ;;  %p3370_p7 = scmp.lt.s32.totalorder %s3368_s20, %s3361_s28 }
 0x110   : > { %p3365_p8 = pneg %p3364_p1  ;;  %p3371_p5 = por %p3370_p7, %p3369_p13 }
 0x112   : > { %p3372_p2 = pnand %p3371_p5, %p3365_p8 }
 0x114   : > { %3375 = shalt.err (!%p3372_p2)
}
 0x115   : > { %2997 = dma.hbm_to_vmem [thread:$0]  (!%p3977_p3), %s3973_s1, 128, %s3968_s21, %s405_s4  }
 0x116   : > { %s4493_s0 = sld [smem:[#allocation34_spill]] }
 0x11c   : > { %p4494_p4 = scmp.ne.s32.totalorder %s4493_s0, 0 }
 0x11d   : > { %s4495_s3 = sld [smem:[#allocation33_spill]] (!%p4494_p4) }
 0x11e   : > { %426 = sbr.rel (%p4494_p4) target bundleno = 2088 (0x828), region = 52 }
 0x123   : > { %p4496_p12 = scmp.ne.s32.totalorder (!%p4494_p4), %s4495_s3, 0 }
 0x125   : > { %3477 = dma.done.wait (%p4496_p12), [#allocation5], 16  }
 0x126   : > { %3479 = vsyncadd (%p4496_p12), [#allocation5], 4294967280  ;;  %s4497_s15 = sld [smem:[#allocation32_spill]]  ;;  %s4014_s24 = sand.u32 1, %s3518_s10  }
 0x127   : > { %s2686_s5 = sshll.u32 %s4014_s24, 3 }
 0x128   : > { %s4017_s26 = scalar_lea.vmem [#allocation7], %s2686_s5 }
 0x12c   : > { %s432_s25 = sand.u32 1, %s4497_s15  }
 0x12d   : > { %s433_s28 = scalar_lea.sflag [#allocation8], %s432_s25 }
 0x12e   : > { %3481 = dma.done.wait (%p3940_p11), %s433_s28, 128  }
 0x12f   : > { %3483 = vsyncadd (%p3940_p11), %s433_s28, 4294967168 }
 0x130   : > { %3485 = dma.done.wait (%p4496_p12), [#allocation8], 256  }
 0x131   : > { %3487 = vsyncadd (%p4496_p12), [#allocation8], 4294967040 }
 0x132   : > { %3489 = dma.done.wait (%p4496_p12), [#allocation11], 256  }
 0x133   : > { %3491 = vsyncadd (%p4496_p12), [#allocation11], 4294967040  ;;  %p4498_p13 = scmp.eq.s32.totalorder %s4497_s15, 0 }
 0x135   : > { %3493 = dma.done.wait (%p4498_p13), [#allocation11], 1536   ;;  %p4499_p8 = pmov %p4498_p13 }
 0x137   : > { %3495 = vsyncadd (%p4499_p8), [#allocation11], 4294965760  ;;  %p4500_p11 = pmov %p4499_p8 }
 0x138   : > { %p4501_p3 = pmov %p4499_p8 }
 0x139   : > { %3497 = dma.done.wait (%p4500_p11), [#allocation14], 560  }
 0x13a   : > { %3499 = vsyncadd (%p4501_p3), [#allocation14], 4294966736  ;;  %p4502_p9 = pmov %p4501_p3 }
 0x13b   : > { %p4503_p6 = pmov %p4501_p3 }
 0x13c   : > { %3501 = dma.done.wait (%p4502_p9), [#allocation17], 16  }
 0x13d   : > { %3503 = vsyncadd (%p4503_p6), [#allocation17], 4294967280  ;;  %s2692_s13 = sshll.u32 %s4014_s24, 5  ;;  %s4044_s21 = scalar_lea.vmem [#allocation18], %s2686_s5 }
 0x13e   : > { %s4046_s1 = scalar_lea.vmem [#allocation19], %s2692_s13  ;;  %s4504_s4 = sld [smem:[#allocation31_spill]] }
 0x144   : > { %p2693_p0 = scmp.ne.s32.totalorder %s4504_s4, 0 }
 0x145   : > { %v507_v0 = vld [vmem:[#allocation12 + $0x20] sm:$0xff] (!%p2693_p0)  ;;  %v508_v1 = vld [vmem:[#allocation12 + $0x28] sm:$0xff] (!%p2693_p0)  ;;  %vm519_vm0 = vcmask (!%p2693_p0), 261120   ;;  %v509_v5 = vld [vmem:[#allocation12 + $0x30] sm:$0xff] (!%p2693_p0) }
 0x146   : > { %503 = sbr.rel (%p2693_p0) target bundleno = 553 (0x229), region = 88  ;;  %v604_v2 = vld [vmem:[#allocation12 + $0x40] sm:$0xff] (!%p2693_p0)  ;;  %v2888_v3 = vpack.c.bf16 (!%p2693_p0), %v508_v1, %v507_v0  ;;  %v605_v4 = vld [vmem:[#allocation12 + $0x48] sm:$0xff] (!%p2693_p0)  ;;  %v510_v6 = vld [vmem:[#allocation12 + $0x38] sm:$0xff] (!%p2693_p0) }
 0x147   : > { %v2896_v7 = vpack.c.bf16 (!%p2693_p0), %v605_v4, %v604_v2  ;;  %v2892_v8 = vpack.c.bf16 (!%p2693_p0), %v510_v6, %v509_v5  ;;  %v606_v9 = vld [vmem:[#allocation12 + $0x50] sm:$0xff] (!%p2693_p0)  ;;  %v607_v10 = vld [vmem:[#allocation12 + $0x58] sm:$0xff] (!%p2693_p0)  ;;  %v504_v11 = vld [vmem:[#allocation9] sm:$0xff] (!%p2693_p0) }
 0x148   : > { %2889 = vmatprep.subr.bf16.mxu0 (!%p2693_p0), %v2888_v3  ;;  %v2900_v12 = vpack.c.bf16 (!%p2693_p0), %v607_v10, %v606_v9  ;;  %2796 = vmatprep.mubr.msk.f32.mxu0 (!%p2693_p0), %vm519_vm0, %v504_v11  ;;  %v601_v13 = vld [vmem:[#allocation10] sm:$0xff] (!%p2693_p0)  ;;  %v505_v14 = vld [vmem:[#allocation9 + $0x8] sm:$0xff] (!%p2693_p0)  ;;  %v602_v15 = vld [vmem:[#allocation10 + $0x8] sm:$0xff] (!%p2693_p0) }
 0x149   : > { %2897 = vmatprep.subr.bf16.mxu1 (!%p2693_p0), %v2896_v7  ;;  %2891 = vmatpush3.bf16.msra.mxu0 (!%p2693_p0), %v2888_v3  ;;  %v2694_v16 = vld [vmem:[#allocation13 + $0x1] ss:$0 sm:$0xff] (!%p2693_p0)  ;;  %v2697_v17 = vld [vmem:[#allocation13 + $0x2] ss:$0 sm:$0xff] (!%p2693_p0) }
 0x14a   : > { %2899 = vmatpush3.bf16.msra.mxu1 (!%p2693_p0), %v2896_v7  ;;  %2893 = vmatprep.subr.bf16.mxu0 (!%p2693_p0), %v2892_v8 }
 0x14b   : > { %2901 = vmatprep.subr.bf16.mxu1 (!%p2693_p0), %v2900_v12  ;;  %2807 = vmatprep.mubr.msk.f32.mxu1 (!%p2693_p0), %vm519_vm0, %v601_v13 }
 0x14d   : > { %2895 = vmatpush3.bf16.msra.mxu0 %v2892_v8 }
 0x14e   : > { %2903 = vmatpush3.bf16.msra.mxu1 %v2900_v12 }
 0x150   : > { %2797 = vmatmul.mubr.msk.f32.vlgmr.msra.gmra.mrb[0].mxu0 %vm519_vm0, %v505_v14 }
 0x151   : > { %2808 = vmatmul.mubr.msk.f32.vlgmr.msra.gmra.mrb[0].mxu1 %vm519_vm0, %v602_v15 }
 0x223   : > { %v2798_v18 = vpop.f32.mrb[0].mxu0 }
 0x224   : > { %v598_v19 = vadd.f32 %v2798_v18, %v2694_v16  ;;  %v2809_v20 = vpop.f32.mrb[0].mxu1  ;;  %v592_v21 = vpop.f32.mrb[1].mxu0 }
 0x225   : > { %v694_v22 = vadd.f32 %v2809_v20, %v2697_v17  ;;  %v593_v23 = vadd.f32 %v2694_v16, %v592_v21  ;;  %v688_v24 = vpop.f32.mrb[1].mxu1 }
 0x226   : > { %698 = vst.msk [vmem:[#allocation2 + $0x8] sm:$0xff] %vm519_vm0, %v598_v19  ;;  %v689_v25 = vadd.f32 %v2697_v17, %v688_v24 }
 0x227   : > { %700 = vst.msk [vmem:[#allocation3 + $0x8] sm:$0xff] %vm519_vm0, %v694_v22  ;;  %697 = vst.msk [vmem:[#allocation2] sm:$0xff] %vm519_vm0, %v593_v23 }
 0x228   : > { %699 = vst.msk [vmem:[#allocation3] sm:$0xff] %vm519_vm0, %v689_v25 }
 0x229 PF: > { %v702_v26 = vld [vmem:[#allocation12] sm:$0xff]  ;;  %v703_v27 = vld [vmem:[#allocation12 + $0x8] sm:$0xff]  ;;  %v704_v28 = vld [vmem:[#allocation12 + $0x10] sm:$0xff]  ;;  %v3568_v29 = vmov 0.0|0.0   ;;  %vm3569_vm1 = vmmov 0   ;;  %v3570_v32 = vmov 0.0   ;;  %v802_v41 = vlaneseq }
 0x22a   : > { %2904 = vmatprep.subr.bf16.mxu0 %v3568_v29  ;;  %v2905_v30 = vpack.c.bf16 %v703_v27, %v702_v26  ;;  %v705_v31 = vld [vmem:[#allocation12 + $0x18] sm:$0xff]  ;;  %2818 = vmatprep.mubr.msk.f32.mxu0 %vm3569_vm1, %v3570_v32  ;;  %s3571_s12 = smov 112   ;;  %s3572_s20 = smov 120   ;;  %vm713_vm2 = vcmask 261120   ;;  %v3574_v39 = vmov 1983009808  }
 0x22b   : > { %v2908_v34 = vpack.c.bf16 %v705_v31, %v704_v28  ;;  %2910 = vmatprep.subr.bf16.mxu1 %v3568_v29  ;;  %2825 = vmatprep.mubr.msk.f32.mxu1 %vm3569_vm1, %v3570_v32  ;;  %v701_v36 = vld [vmem:[%s4017_s26] sm:$0xff]  ;;  %s3573_s0 = smov 104   ;;  %v800_v40 = vunpack.c.l.s4 %v3574_v39  ;;  %v4075_v45 = vshrl.u32 %v802_v41, 7  ;;  %v3575_v49 = vmov 1934713408   ;;  %s4442_s3 = smov 8  }
 0x22c   : > { %2906 = vmatpush3.bf16.msra.mxu0 %v2905_v30  ;;  %v832_v50 = vunpack.c.l.s4 %v3575_v49  ;;  %vm1530_vm3 = vcmask 64512   ;;  %vm1847_vm6 = vcmask 130048   ;;  %s4507_s15 = sld [smem:[#allocation31_spill]]  ;;  %s3578_s25 = smov 16   ;;  %vm2350_vm7 = vcmask 195584  }
 0x22d   : > { %v934_v35 = vld [vmem:[#allocation2 + $0x8] sm:$0xff]  ;;  %2907 = vmatprep.subr.bf16.mxu0 %v3568_v29  ;;  %v801_v44 = vunpack.c.0.s8 %v800_v40  ;;  %vm4128_vm4 = vmpackc.low %vm1530_vm3, %vm1530_vm3  ;;  %s3579_s5 = smov 24   ;;  %s2736_s28 = sshll.u32 %s3542_s16, 3 }
 0x22e   : > { %v933_v33 = vld [vmem:[#allocation2] sm:$0xff]  ;;  %v833_v59 = vunpack.c.0.s8 %v832_v50  ;;  %s2472_s26 = sshll.u32 %s4046_s1, 4  ;;  %p4509_p1 = scmp.ne.s32.totalorder %s4489_s27, 0  ;;  %s4299_s26 = int_to_ptr.vmem [resolvable:$true] %s2472_s26 }
 0x22f   : > { %943 = vrot.lane.b32.xlu1 %v933_v33, %s3571_s12  ;;  %937 = vrot.lane.b32.xlu0 %v933_v33, %s3572_s20  ;;  %v4078_v48 = vsub.s32 %v801_v44, %v4075_v45  ;;  %s3580_s6 = smov [#allocation19]  }
 0x230   : > { %2909 = vmatpush3.bf16.msra.mxu0 %v2908_v34  ;;  %v4089_v4 = vsub.s32 %v833_v59, %v4075_v45 }
 0x231   : > { %2914 = vmatprep.subr.bf16.mxu0 %v3568_v29 }
 0x232   : > { %s2469_s13 = sadd.s32 %s4507_s15, %s2736_s28 }
 0x233   : > { %945 = vrot.lane.b32.xlu1 %v934_v35, %s3571_s12  ;;  %939 = vrot.lane.b32.xlu0 %v934_v35, %s3572_s20  ;;  %s2737_s4 = sshll.u32 %s2469_s13, 7 }
 0x234   : > { %2819 = vmatmul.mubr.msk.f32.vlgmr.msra.gmra.mrb[0].mxu0 %vm713_vm2, %v701_v36 }
 0x235   : > { %2832 = vmatprep.mubr.msk.f32.mxu0 %vm3569_vm1, %v3570_v32 }
 0x237   : > { %951 = vrot.lane.b32.xlu1 %v934_v35, %s3573_s0  ;;  %949 = vrot.lane.b32.xlu0 %v933_v33, %s3573_s0 }
 0x2a1   : > { %v944_v37 = vpop.permute.xlu1 %943  ;;  %v938_v38 = vpop.permute.xlu0 %937 }
 0x2a2   : > { %v955_v55 = vcombine.low %v933_v33, %v944_v37  ;;  %v956_v56 = vcombine.high %v933_v33, %v944_v37 }
 0x2a4   : > { %v963_v0 = vrot.slane %v955_v55, %v4078_v48  ;;  %v970_v1 = vrot.slane %v956_v56, %v4078_v48  ;;  %v2700_v56 = vld [vmem:[#allocation13] ss:$0 sm:$0xff]  ;;  %v1521_v55 = vld [vmem:[#allocation4] sm:$0x1] }
 0x2a5   : > { %v946_v42 = vpop.permute.xlu1 %945  ;;  %v940_v43 = vpop.permute.xlu0 %939  ;;  %vm1522_vm5 = vcmp.gt.f32.partialorder %v1521_v55, 0.0 }
 0x2a6   : > { %v1023_v51 = vcombine.low %v934_v35, %v946_v42  ;;  %v1024_v52 = vcombine.high %v934_v35, %v946_v42 }
 0x2a8   : > { %v1031_v60 = vrot.slane %v1023_v51, %v4078_v48  ;;  %v1038_v61 = vrot.slane %v1024_v52, %v4078_v48 }
 0x2a9   : > { %v952_v46 = vpop.permute.xlu1 %951  ;;  %v950_v47 = vpop.permute.xlu0 %949 }
 0x2aa   : > { %v1039_v53 = vcombine.low %v940_v43, %v952_v46  ;;  %v1040_v54 = vcombine.high %v940_v43, %v952_v46  ;;  %v971_v57 = vcombine.low %v938_v38, %v950_v47  ;;  %v972_v58 = vcombine.high %v938_v38, %v950_v47 }
 0x2ac   : > { %v1047_v62 = vrot.slane %v1039_v53, %v4078_v48  ;;  %v1054_v63 = vrot.slane %v1040_v54, %v4078_v48  ;;  %v979_v2 = vrot.slane %v971_v57, %v4078_v48  ;;  %v986_v3 = vrot.slane %v972_v58, %v4078_v48 }
 0x2ae   : > { %v1055_v5 = vcombine.low %v1031_v60, %v1047_v62  ;;  %v1056_v6 = vcombine.high %v1031_v60, %v1047_v62  ;;  %v1071_v7 = vcombine.low %v1038_v61, %v1054_v63  ;;  %v1072_v8 = vcombine.high %v1038_v61, %v1054_v63  ;;  %v4141_v60 = vld [vmem:[#allocation3] sm:$0xff] }
 0x2af   : > { %v987_v9 = vcombine.low %v963_v0, %v979_v2  ;;  %v988_v10 = vcombine.high %v963_v0, %v979_v2  ;;  %v1003_v11 = vcombine.low %v970_v1, %v986_v3  ;;  %v1004_v12 = vcombine.high %v970_v1, %v986_v3 }
 0x2b0   : > { %v1063_v13 = vrot.slane %v1055_v5, %v4089_v4  ;;  %v1070_v14 = vrot.slane %v1056_v6, %v4089_v4  ;;  %v1079_v15 = vrot.slane %v1071_v7, %v4089_v4  ;;  %v1086_v16 = vrot.slane %v1072_v8, %v4089_v4 }
 0x2b1   : > { %v995_v17 = vrot.slane %v987_v9, %v4089_v4  ;;  %v1002_v18 = vrot.slane %v988_v10, %v4089_v4  ;;  %v1011_v19 = vrot.slane %v1003_v11, %v4089_v4  ;;  %v1018_v20 = vrot.slane %v1004_v12, %v4089_v4 }
 0x2b2   : > { %v1159_v21 = vcombine.low %v1063_v13, %v1070_v14  ;;  %v2706_v22 = vcombine.high %v1063_v13, %v1070_v14  ;;  %v1175_v23 = vcombine.low %v1079_v15, %v1086_v16  ;;  %v2707_v24 = vcombine.high %v1079_v15, %v1086_v16 }
 0x2b3   : > { %v1091_v25 = vcombine.low %v995_v17, %v1002_v18  ;;  %v2704_v26 = vcombine.high %v995_v17, %v1002_v18  ;;  %v1107_v27 = vcombine.low %v1011_v19, %v1018_v20  ;;  %v2705_v28 = vcombine.high %v1011_v19, %v1018_v20 }
 0x2b4   : > { %v4100_v30 = vrot.slane %v1159_v21, %v4078_v48  ;;  %v4103_v31 = vrot.slane %v2706_v22, %v4078_v48  ;;  %v4106_v33 = vrot.slane %v1175_v23, %v4078_v48  ;;  %v4109_v34 = vrot.slane %v2707_v24, %v4078_v48 }
 0x2b5   : > { %v4112_v35 = vrot.slane %v1091_v25, %v4078_v48  ;;  %v1106_v36 = vrot.slane %v2704_v26, %v4078_v48  ;;  %v1114_v37 = vrot.slane %v1107_v27, %v4078_v48  ;;  %v1122_v38 = vrot.slane %v2705_v28, %v4078_v48 }
 0x2b6   : > { %v1191_v41 = vcombine.low %v4100_v30, %v4103_v31  ;;  %v1207_v42 = vcombine.low %v4106_v33, %v4109_v34  ;;  %v1192_v13 = vcombine.high %v4100_v30, %v4103_v31  ;;  %v1208_v14 = vcombine.high %v4106_v33, %v4109_v34 }
 0x2b7   : > { %v1123_v39 = vcombine.low %v4112_v35, %v1106_v36  ;;  %v1139_v40 = vcombine.low %v1114_v37, %v1122_v38  ;;  %v1124_v15 = vcombine.high %v4112_v35, %v1106_v36  ;;  %v1140_v16 = vcombine.high %v1114_v37, %v1122_v38 }
 0x2b8   : > { %v1199_v46 = vrot.slane %v1191_v41, %v4089_v4  ;;  %v1215_v47 = vrot.slane %v1207_v42, %v4089_v4  ;;  %v1206_v25 = vrot.slane %v1192_v13, %v4089_v4  ;;  %v1222_v26 = vrot.slane %v1208_v14, %v4089_v4 }
 0x2b9   : > { %v1131_v43 = vrot.slane %v1123_v39, %v4089_v4  ;;  %v1147_v44 = vrot.slane %v1139_v40, %v4089_v4  ;;  %v1138_v27 = vrot.slane %v1124_v15, %v4089_v4  ;;  %v1154_v28 = vrot.slane %v1140_v16, %v4089_v4 }
 0x2ba   : > { %v1223_v51 = vcombine.low %v1199_v46, %v1215_v47  ;;  %v1224_v52 = vcombine.high %v1199_v46, %v1215_v47  ;;  %v1225_v38 = vcombine.low %v1206_v25, %v1222_v26  ;;  %v1226_v40 = vcombine.high %v1206_v25, %v1222_v26 }
 0x2bb   : > { %v1155_v49 = vcombine.low %v1131_v43, %v1147_v44  ;;  %v1156_v50 = vcombine.high %v1131_v43, %v1147_v44  ;;  %v1157_v37 = vcombine.low %v1138_v27, %v1154_v28  ;;  %v1158_v39 = vcombine.high %v1138_v27, %v1154_v28 }
 0x2bd   : > { %v2911_v53 = vpack.c.bf16 %v1223_v51, %v1155_v49  ;;  %v2915_v54 = vpack.c.bf16 %v1224_v52, %v1156_v50  ;;  %v2919_v49 = vpack.c.bf16 %v1225_v38, %v1157_v37  ;;  %v2923_v50 = vpack.c.bf16 %v1226_v40, %v1158_v39 }
 0x2bf   : > { %2913 = vmatpush3.bf16.xpose.msk.msra.mxu1 %vm4128_vm4, %v2911_v53  ;;  %2917 = vmatpush3.bf16.xpose.msk.msra.mxu0 %vm4128_vm4, %v2915_v54 }
 0x2c0   : > { %2918 = vmatprep.subr.bf16.mxu1 %v3568_v29  ;;  %2922 = vmatprep.subr.bf16.mxu0 %v3568_v29 }
 0x307   : > { %v783_v57 = vpop.f32.mrb[0].mxu0 }
 0x308   : > { %v784_v58 = vadd.f32 %v2700_v56, %v783_v57  ;;  %v2820_v59 = vpop.f32.mrb[1].mxu0  ;;  %v1527_v56 = vsub.s32 0, %v4075_v45  ;;  %v3576_v57 = vmov -1e+30  }
 0x30a   : > { %791 = vrot.lane.b32.xlu1 %v784_v58, %s3571_s12  ;;  %788 = vrot.lane.b32.xlu0 %v784_v58, %s3572_s20 }
 0x30e   : > { %794 = vrot.lane.b32.xlu0 %v784_v58, %s3573_s0  ;;  %1231 = vrot.lane.b32.xlu1 %v4141_v60, %s3572_s20 }
 0x37c   : > { %v792_v61 = vpop.permute.xlu1 %791  ;;  %v789_v62 = vpop.permute.xlu0 %788 }
 0x37d   : > { %v797_v63 = vcombine.low %v784_v58, %v792_v61  ;;  %v798_v0 = vcombine.high %v784_v58, %v792_v61  ;;  %v1523_v58 = vsel %vm1522_vm5, 0.0, %v3576_v57 }
 0x37e   : > { %v1528_v59 = vrot.slane %v1523_v58, %v1527_v56 }
 0x37f   : > { %v805_v5 = vrot.slane %v797_v63, %v4078_v48  ;;  %v812_v6 = vrot.slane %v798_v0, %v4078_v48 }
 0x380   : > { %v795_v1 = vpop.permute.xlu0 %794  ;;  %v1232_v14 = vpop.permute.xlu1 %1231 }
 0x381   : > { %v813_v2 = vcombine.low %v789_v62, %v795_v1  ;;  %v814_v3 = vcombine.high %v789_v62, %v795_v1 }
 0x383   : > { %v821_v7 = vrot.slane %v813_v2, %v4078_v48  ;;  %v828_v8 = vrot.slane %v814_v3, %v4078_v48 }
 0x385   : > { %v829_v9 = vcombine.low %v805_v5, %v821_v7  ;;  %v830_v10 = vcombine.high %v805_v5, %v821_v7  ;;  %v845_v11 = vcombine.low %v812_v6, %v828_v8  ;;  %v846_v12 = vcombine.high %v812_v6, %v828_v8 }
 0x387   : > { %v837_v17 = vrot.slane %v829_v9, %v4089_v4  ;;  %v844_v18 = vrot.slane %v830_v10, %v4089_v4  ;;  %v853_v19 = vrot.slane %v845_v11, %v4089_v4  ;;  %v860_v20 = vrot.slane %v846_v12, %v4089_v4  ;;  %v1228_v11 = vld [vmem:[#allocation3 + $0x8] sm:$0xff] }
 0x389   : > { %v865_v21 = vcombine.low %v837_v17, %v844_v18  ;;  %v2702_v22 = vcombine.high %v837_v17, %v844_v18  ;;  %v881_v23 = vcombine.low %v853_v19, %v860_v20  ;;  %v2703_v24 = vcombine.high %v853_v19, %v860_v20 }
 0x38b   : > { %v872_v30 = vrot.slane %v865_v21, %v4078_v48  ;;  %v880_v31 = vrot.slane %v2702_v22, %v4078_v48  ;;  %v888_v33 = vrot.slane %v881_v23, %v4078_v48  ;;  %v896_v34 = vrot.slane %v2703_v24, %v4078_v48 }
 0x38d   : > { %v897_v35 = vcombine.low %v872_v30, %v880_v31  ;;  %v913_v36 = vcombine.low %v888_v33, %v896_v34  ;;  %v898_v43 = vcombine.high %v872_v30, %v880_v31  ;;  %v914_v44 = vcombine.high %v888_v33, %v896_v34 }
 0x38f   : > { %v905_v41 = vrot.slane %v897_v35, %v4089_v4  ;;  %v921_v42 = vrot.slane %v913_v36, %v4089_v4  ;;  %v912_v51 = vrot.slane %v898_v43, %v4089_v4  ;;  %v928_v52 = vrot.slane %v914_v44, %v4089_v4 }
 0x391   : > { %v929_v46 = vcombine.low %v905_v41, %v921_v42  ;;  %v930_v47 = vcombine.high %v905_v41, %v921_v42  ;;  %v931_v53 = vcombine.low %v912_v51, %v928_v52  ;;  %v932_v54 = vcombine.high %v912_v51, %v928_v52 }
 0x393   : > { %2826 = vmatmul.mubr.msk.f32.vlgmr.msra.gmra.mrb[0].mxu1 %vm1530_vm3, %v929_v46  ;;  %2833 = vmatmul.mubr.msk.f32.vlgmr.msra.gmra.mrb[2].mxu0 %vm1530_vm3, %v930_v47 }
 0x394   : > { %2921 = vmatpush3.bf16.xpose.msk.msra.mxu1 %vm4128_vm4, %v2919_v49  ;;  %2925 = vmatpush3.bf16.xpose.msk.msra.mxu0 %vm4128_vm4, %v2923_v50 }
 0x395   : > { %2839 = vmatprep.mubr.msk.f32.mxu1 %vm3569_vm1, %v3570_v32  ;;  %2846 = vmatprep.mubr.msk.f32.mxu0 %vm3569_vm1, %v3570_v32 }
 0x396   : > { %2926 = vmatprep.subr.bf16.mxu1 %v3568_v29  ;;  %2938 = vmatprep.subr.bf16.mxu0 %v3568_v29 }
 0x39b   : > { %2840 = vmatmul.mubr.msk.f32.vlgmr.msra.gmra.mrb[2].mxu1 %vm1530_vm3, %v931_v53  ;;  %2847 = vmatmul.mubr.msk.f32.vlgmr.msra.gmra.mrb[4].mxu0 %vm1530_vm3, %v932_v54 }
 0x39c   : > { %2853 = vmatprep.mubr.msk.f32.mxu1 %vm3569_vm1, %v3570_v32  ;;  %2885 = vmatprep.mubr.msk.f32.mxu0 %vm3569_vm1, %v3570_v32 }
 0x466   : > { %v1606_v61 = vpop.f32.mrb[0].mxu1  ;;  %v1685_v62 = vpop.f32.mrb[2].mxu0 }
 0x467   : > { %v1607_v63 = vadd.f32 %v1606_v61, %v1528_v59  ;;  %v1686_v0 = vadd.f32 %v1685_v62, %v1528_v59  ;;  %v2827_v1 = vpop.f32.mrb[1].mxu1  ;;  %v2834_v2 = vpop.f32.mrb[3].mxu0 }
 0x469   : > { %v1848_v3 = vsel %vm1847_vm6, %v1607_v63, -inf  ;;  %v1851_v5 = vsel %vm1847_vm6, %v1686_v0, -inf }
 0x46a   : > { %1849 = vmax.xlane.f32.xlu1 %v1848_v3  ;;  %1852 = vmax.xlane.f32.xlu0 %v1851_v5 }
 0x46e   : > { %v1764_v6 = vpop.f32.mrb[2].mxu1  ;;  %v1843_v7 = vpop.f32.mrb[4].mxu0 }
 0x46f   : > { %v1765_v8 = vadd.f32 %v1764_v6, %v1528_v59  ;;  %v2841_v45 = vpop.f32.mrb[3].mxu1  ;;  %v2848_v9 = vpop.f32.mrb[5].mxu0  ;;  %v1844_v12 = vadd.f32 %v1843_v7, %v1528_v59 }
 0x471   : > { %v1854_v10 = vsel %vm1847_vm6, %v1765_v8, -inf  ;;  %v1857_v13 = vsel %vm1847_vm6, %v1844_v12, -inf }
 0x472   : > { %1855 = vmax.xlane.f32.xlu0 %v1854_v10 }
 0x47b   : > { %1237 = vrot.lane.b32.xlu1 %v4141_v60, %s3571_s12 }
 0x488   : > { %1233 = vrot.lane.b32.xlu0 %v1228_v11, %s3572_s20 }
 0x49f   : > { %1858 = vmax.xlane.f32.xlu1 %v1857_v13 }
 0x4b0   : > { %1239 = vrot.lane.b32.xlu1 %v1228_v11, %s3571_s12 }
 0x4f7   : > { %v1850_v15 = vpop.xlane.xlu1 %1849  ;;  %v1853_v16 = vpop.xlane.xlu0 %1852 }
 0x4f8   : > { %v1860_v17 = vsub.f32 %v1607_v63, %v1850_v15  ;;  %v1861_v18 = vsub.f32 %v1686_v0, %v1853_v16 }
 0x4fa   : > { %v1864_v19 = vmul.f32 1.442695, %v1860_v17  ;;  %v1866_v20 = vmul.f32 1.442695, %v1861_v18 }
 0x4fb   : > { %v1238_v27 = vpop.permute.xlu1 %1237 }
 0x4fc   : > { %3128 = vpow2.f32 %v1864_v19  ;;  %v1249_v42 = vcombine.low %v4141_v60, %v1238_v27  ;;  %v1250_v43 = vcombine.high %v4141_v60, %v1238_v27 }
 0x4fd   : > { %3130 = vpow2.f32 %v1866_v20 }
 0x4fe   : > { %v1257_v54 = vrot.slane %v1249_v42, %v4078_v48  ;;  %v1264_v55 = vrot.slane %v1250_v43, %v4078_v48 }
 0x4ff   : > { %v1856_v25 = vpop.xlane.xlu0 %1855 }
 0x500   : > { %v1862_v26 = vsub.f32 %v1765_v8, %v1856_v25 }
 0x502   : > { %v1868_v28 = vmul.f32 1.442695, %v1862_v26 }
 0x503   : > { %v1234_v38 = vpop.permute.xlu0 %1233 }
 0x504   : > { %3132 = vpow2.f32 %v1868_v28 }
 0x506   : > { %v4197_v21 = vpop.eup %3128 }
 0x507   : > { %v4199_v22 = vpop.eup %3130  ;;  %v1872_v23 = vsel %vm1847_vm6, %v4197_v21, 0.0 }
 0x508   : > { %1873 = vadd.xlane.f32.xlu0 %v1872_v23  ;;  %v1875_v24 = vsel %vm1847_vm6, %v4199_v22, 0.0 }
 0x509   : > { %1876 = vadd.xlane.f32.xlu1 %v1875_v24 }
 0x50e   : > { %v4208_v34 = vpop.eup %3132 }
 0x50f   : > { %v1878_v35 = vsel %vm1847_vm6, %v4208_v34, 0.0 }
 0x51a   : > { %1245 = vrot.lane.b32.xlu1 %v1228_v11, %s3573_s0 }
 0x51e   : > { %1243 = vrot.lane.b32.xlu0 %v4141_v60, %s3573_s0  ;;  %s4508_s0 = sld [smem:[#allocation44_spill]] }
 0x52c   : > { %v1859_v30 = vpop.xlane.xlu1 %1858 }
 0x52d   : > { %v1863_v31 = vsub.f32 %v1844_v12, %v1859_v30 }
 0x52f   : > { %v1870_v33 = vmul.f32 1.442695, %v1863_v31 }
 0x530   : > { %v1240_v39 = vpop.permute.xlu1 %1239 }
 0x531   : > { %3134 = vpow2.f32 %v1870_v33  ;;  %v1317_v44 = vcombine.low %v1228_v11, %v1240_v39  ;;  %v1318_v46 = vcombine.high %v1228_v11, %v1240_v39 }
 0x533   : > { %v1325_v58 = vrot.slane %v1317_v44, %v4078_v48  ;;  %v1332_v60 = vrot.slane %v1318_v46, %v4078_v48 }
 0x53b   : > { %v4212_v36 = vpop.eup %3134 }
 0x53c   : > { %v1881_v37 = vsel %vm1847_vm6, %v4212_v36, 0.0 }
 0x53d   : > { %1879 = vadd.xlane.f32.xlu0 %v1878_v35 }
 0x541   : > { %1882 = vadd.xlane.f32.xlu0 %v1881_v37 }
 0x595   : > { %v1874_v40 = vpop.xlane.xlu0 %1873 }
 0x596   : > { %3136 = vrcp.f32 %v1874_v40  ;;  %v1877_v41 = vpop.xlane.xlu1 %1876 }
 0x597   : > { %3138 = vrcp.f32 %v1877_v41 }
 0x599   : > { %v1244_v47 = vpop.permute.xlu0 %1243 }
 0x59a   : > { %v1265_v49 = vcombine.low %v1232_v14, %v1244_v47  ;;  %v1266_v50 = vcombine.high %v1232_v14, %v1244_v47  ;;  %v1246_v51 = vpop.permute.xlu1 %1245 }
 0x59b   : > { %v1333_v52 = vcombine.low %v1234_v38, %v1246_v51  ;;  %v1334_v53 = vcombine.high %v1234_v38, %v1246_v51 }
 0x59c   : > { %v1273_v56 = vrot.slane %v1265_v49, %v4078_v48  ;;  %v1280_v57 = vrot.slane %v1266_v50, %v4078_v48 }
 0x59d   : > { %v1341_v59 = vrot.slane %v1333_v52, %v4078_v48  ;;  %v1348_v61 = vrot.slane %v1334_v53, %v4078_v48 }
 0x59e   : > { %v1281_v62 = vcombine.low %v1257_v54, %v1273_v56  ;;  %v1282_v63 = vcombine.high %v1257_v54, %v1273_v56  ;;  %v1297_v0 = vcombine.low %v1264_v55, %v1280_v57  ;;  %v1298_v1 = vcombine.high %v1264_v55, %v1280_v57 }
 0x59f   : > { %v1349_v2 = vcombine.low %v1325_v58, %v1341_v59  ;;  %v1350_v3 = vcombine.high %v1325_v58, %v1341_v59  ;;  %v1365_v5 = vcombine.low %v1332_v60, %v1348_v61  ;;  %v1366_v6 = vcombine.high %v1332_v60, %v1348_v61 }
 0x5a0   : > { %v3137_v7 = vpop.eup %3136  ;;  %v1289_v8 = vrot.slane %v1281_v62, %v4089_v4  ;;  %v1296_v45 = vrot.slane %v1282_v63, %v4089_v4  ;;  %v1305_v9 = vrot.slane %v1297_v0, %v4089_v4  ;;  %v1312_v10 = vrot.slane %v1298_v1, %v4089_v4 }
 0x5a1   : > { %v3139_v11 = vpop.eup %3138  ;;  %v1888_v12 = vmul.f32 %v3137_v7, %v1874_v40  ;;  %v1357_v13 = vrot.slane %v1349_v2, %v4089_v4  ;;  %v1364_v14 = vrot.slane %v1350_v3, %v4089_v4  ;;  %v1373_v15 = vrot.slane %v1365_v5, %v4089_v4 }
 0x5a2   : > { %v1889_v16 = vmul.f32 %v3139_v11, %v1877_v41  ;;  %v1385_v17 = vcombine.low %v1289_v8, %v1296_v45  ;;  %v2708_v18 = vcombine.high %v1289_v8, %v1296_v45  ;;  %v1401_v19 = vcombine.low %v1305_v9, %v1312_v10 }
 0x5a3   : > { %v1892_v20 = vsub.f32 2.0, %v1888_v12  ;;  %v2709_v23 = vcombine.high %v1305_v9, %v1312_v10  ;;  %v1380_v24 = vrot.slane %v1366_v6, %v4089_v4  ;;  %v1453_v25 = vcombine.low %v1357_v13, %v1364_v14 }
 0x5a4   : > { %v1893_v26 = vsub.f32 2.0, %v1889_v16  ;;  %v1392_v27 = vrot.slane %v1385_v17, %v4078_v48  ;;  %v1400_v28 = vrot.slane %v2708_v18, %v4078_v48  ;;  %v1408_v30 = vrot.slane %v1401_v19, %v4078_v48 }
 0x5a5   : > { %v1896_v31 = vmul.f32 %v3137_v7, %v1892_v20  ;;  %v1416_v33 = vrot.slane %v2709_v23, %v4078_v48  ;;  %v1460_v35 = vrot.slane %v1453_v25, %v4078_v48  ;;  %v2710_v37 = vcombine.high %v1357_v13, %v1364_v14 }
 0x5a6   : > { %v1897_v38 = vmul.f32 %v3139_v11, %v1893_v26  ;;  %v1469_v39 = vcombine.low %v1373_v15, %v1380_v24  ;;  %v2711_v40 = vcombine.high %v1373_v15, %v1380_v24  ;;  %v1417_v41 = vcombine.low %v1392_v27, %v1400_v28 }
 0x5a7   : > { %v1900_v42 = vmul.f32 %v4197_v21, %v1896_v31  ;;  %v1468_v43 = vrot.slane %v2710_v37, %v4078_v48  ;;  %v1433_v44 = vcombine.low %v1408_v30, %v1416_v33  ;;  %v1418_v54 = vcombine.high %v1392_v27, %v1400_v28 }
 0x5a8   : > { %v1901_v46 = vmul.f32 %v4199_v22, %v1897_v38  ;;  %v1476_v47 = vrot.slane %v1469_v39, %v4078_v48  ;;  %v1484_v49 = vrot.slane %v2711_v40, %v4078_v48  ;;  %v1425_v50 = vrot.slane %v1417_v41, %v4089_v4 }
 0x5a9   : > { %1904 = vst.msk [vmem:[%s4046_s1] sm:$0xff] %vm1847_vm6, %v1900_v42  ;;  %v1441_v51 = vrot.slane %v1433_v44, %v4089_v4  ;;  %v1485_v52 = vcombine.low %v1460_v35, %v1468_v43  ;;  %v1434_v55 = vcombine.high %v1408_v30, %v1416_v33  ;;  %v1486_v57 = vcombine.high %v1460_v35, %v1468_v43 }
 0x5aa   : > { %1905 = vst.msk [vmem:[%s4046_s1 + $0x8] sm:$0xff] %vm1847_vm6, %v1901_v46  ;;  %v1501_v53 = vcombine.low %v1476_v47, %v1484_v49  ;;  %v1502_v58 = vcombine.high %v1476_v47, %v1484_v49  ;;  %v1432_v61 = vrot.slane %v1418_v54, %v4089_v4  ;;  %v2353_v47 = vld [vmem:[#allocation15 + $0x8] sm:$0xff] }
 0x5ab   : > { %v1493_v21 = vrot.slane %v1485_v52, %v4089_v4  ;;  %v1449_v56 = vcombine.low %v1425_v50, %v1441_v51  ;;  %v1450_v59 = vcombine.high %v1425_v50, %v1441_v51  ;;  %v1448_v62 = vrot.slane %v1434_v55, %v4089_v4 }
 0x5ac   : > { %v1509_v22 = vrot.slane %v1501_v53, %v4089_v4  ;;  %v1500_v1 = vrot.slane %v1486_v57, %v4089_v4  ;;  %v1516_v2 = vrot.slane %v1502_v58, %v4089_v4  ;;  %v2355_v57 = vld [vmem:[#allocation15 + $0x18] sm:$0xff] }
 0x5ad   : > { %v1451_v5 = vcombine.low %v1432_v61, %v1448_v62  ;;  %v1452_v13 = vcombine.high %v1432_v61, %v1448_v62 }
 0x5ae   : > { %v1517_v60 = vcombine.low %v1493_v21, %v1509_v22  ;;  %v1518_v0 = vcombine.high %v1493_v21, %v1509_v22  ;;  %v1519_v6 = vcombine.low %v1500_v1, %v1516_v2  ;;  %v1520_v14 = vcombine.high %v1500_v1, %v1516_v2  ;;  %v2354_v22 = vld [vmem:[#allocation15 + $0x10] sm:$0xff] }
 0x5af   : > { %v2942_v62 = vpack.c.bf16 %v2355_v57, %v2354_v22 }
 0x5b0   : > { %v2927_v63 = vpack.c.bf16 %v1517_v60, %v1449_v56  ;;  %v2930_v3 = vpack.c.bf16 %v1518_v0, %v1450_v59  ;;  %v2933_v7 = vpack.c.bf16 %v1519_v6, %v1451_v5  ;;  %v2936_v19 = vpack.c.bf16 %v1520_v14, %v1452_v13 }
 0x5b2   : > { %2928 = vmatpush3.bf16.msra.mxu1 %v2927_v63 }
 0x5b3   : > { %2929 = vmatprep.subr.bf16.mxu1 %v3568_v29 }
 0x5b5   : > { %2854 = vmatmul.mubr.msk.f32.vlgmr.msra.gmra.mrb[4].mxu1 %vm1847_vm6, %v1900_v42 }
 0x5b6   : > { %2931 = vmatpush3.bf16.msra.mxu1 %v2930_v3  ;;  %2860 = vmatprep.mubr.msk.f32.mxu1 %vm3569_vm1, %v3570_v32 }
 0x5b7   : > { %2932 = vmatprep.subr.bf16.mxu1 %v3568_v29 }
 0x5b9   : > { %2861 = vmatmul.mubr.msk.f32.vlgmr.msra.gmra.mrb[6].mxu1 %vm1847_vm6, %v1901_v46  ;;  %v2352_v46 = vld [vmem:[#allocation15] sm:$0xff] }
 0x5ba   : > { %2934 = vmatpush3.bf16.msra.mxu1 %v2933_v7  ;;  %2867 = vmatprep.mubr.msk.f32.mxu1 %vm3569_vm1, %v3570_v32  ;;  %v2939_v53 = vpack.c.bf16 %v2353_v47, %v2352_v46 }
 0x5bb   : > { %2935 = vmatprep.subr.bf16.mxu1 %v3568_v29 }
 0x5bc   : > { %2940 = vmatpush3.bf16.msra.mxu0 %v2939_v53 }
 0x5bd   : > { %2941 = vmatprep.subr.bf16.mxu0 %v3568_v29 }
 0x5c0   : > { %2943 = vmatpush3.bf16.msra.mxu0 %v2942_v62 }
 0x5ca   : > { %v1880_v8 = vpop.xlane.xlu0 %1879 }
 0x5cb   : > { %3140 = vrcp.f32 %v1880_v8 }
 0x5ce   : > { %v1883_v45 = vpop.xlane.xlu0 %1882 }
 0x5cf   : > { %3142 = vrcp.f32 %v1883_v45 }
 0x5d5   : > { %v3141_v9 = vpop.eup %3140 }
 0x5d6   : > { %v1890_v10 = vmul.f32 %v3141_v9, %v1880_v8 }
 0x5d8   : > { %v1894_v11 = vsub.f32 2.0, %v1890_v10 }
 0x5d9   : > { %v3143_v12 = vpop.eup %3142 }
 0x5da   : > { %v1898_v15 = vmul.f32 %v3141_v9, %v1894_v11  ;;  %v1891_v16 = vmul.f32 %v3143_v12, %v1883_v45 }
 0x5dc   : > { %v1902_v17 = vmul.f32 %v4208_v34, %v1898_v15  ;;  %v1895_v18 = vsub.f32 2.0, %v1891_v16 }
 0x5de   : > { %1906 = vst.msk [vmem:[%s4046_s1 + $0x10] sm:$0xff] %vm1847_vm6, %v1902_v17  ;;  %v1899_v20 = vmul.f32 %v3143_v12, %v1895_v18  ;;  %2868 = vmatmul.mubr.msk.f32.vlgmr.msra.gmra.mrb[8].mxu1 %vm1847_vm6, %v1902_v17 }
 0x5df   : > { %2937 = vmatpush3.bf16.msra.mxu1 %v2936_v19  ;;  %2874 = vmatprep.mubr.msk.f32.mxu1 %vm3569_vm1, %v3570_v32 }
 0x5e0   : > { %v1903_v23 = vmul.f32 %v4212_v36, %v1899_v20 }
 0x5e2   : > { %1907 = vst.msk [vmem:[%s4046_s1 + $0x18] sm:$0xff] %vm1847_vm6, %v1903_v23  ;;  %2875 = vmatmul.mubr.msk.f32.vlgmr.msra.gmra.mrb[10].mxu1 %vm1847_vm6, %v1903_v23  ;;  %s3380_s1 = sshll.u32 %s3580_s6, 4  ;;  %s3381_s1 = int_to_ptr.vmem [resolvable:$false] %s3380_s1 }
 0x5e3   : > { %s3382_s28 = scalar_lea.vmem %s3381_s1, 1024  ;;  %p3383_p2 = scmp.lt.s32.totalorder %s4299_s26, %s3381_s1 }
 0x688   : > { %v1977_v24 = vpop.f32.mrb[4].mxu1 }
 0x689   : > { %v2855_v25 = vpop.f32.mrb[5].mxu1 }
 0x68c   : > { %v2050_v34 = vpop.f32.mrb[6].mxu1 }
 0x68d   : > { %v2862_v26 = vpop.f32.mrb[7].mxu1 }
 0x6b1   : > { %v2123_v27 = vpop.f32.mrb[8].mxu1 }
 0x6b2   : > { %v2200_v28 = vcombine.low %v1977_v24, %v2123_v27  ;;  %v2201_v30 = vcombine.high %v1977_v24, %v2123_v27  ;;  %v2869_v31 = vpop.f32.mrb[9].mxu1 }
 0x6b4   : > { %v2208_v32 = vrot.slane %v2200_v28, %v4078_v48  ;;  %v2215_v36 = vrot.slane %v2201_v30, %v4078_v48 }
 0x6b5   : > { %v2196_v33 = vpop.f32.mrb[10].mxu1 }
 0x6b6   : > { %v2216_v35 = vcombine.low %v2050_v34, %v2196_v33  ;;  %v2217_v37 = vcombine.high %v2050_v34, %v2196_v33  ;;  %v2876_v38 = vpop.f32.mrb[11].mxu1 }
 0x6b8   : > { %v2224_v39 = vrot.slane %v2216_v35, %v4078_v48  ;;  %v2231_v40 = vrot.slane %v2217_v37, %v4078_v48 }
 0x6ba   : > { %v2232_v41 = vcombine.low %v2208_v32, %v2224_v39  ;;  %v2233_v42 = vcombine.high %v2208_v32, %v2224_v39  ;;  %v2248_v43 = vcombine.low %v2215_v36, %v2231_v40  ;;  %v2249_v44 = vcombine.high %v2215_v36, %v2231_v40 }
 0x6bc   : > { %v2240_v49 = vrot.slane %v2232_v41, %v4089_v4  ;;  %v2247_v50 = vrot.slane %v2233_v42, %v4089_v4  ;;  %v2256_v51 = vrot.slane %v2248_v43, %v4089_v4  ;;  %v2263_v52 = vrot.slane %v2249_v44, %v4089_v4 }
 0x6be   : > { %v2268_v21 = vcombine.low %v2240_v49, %v2247_v50  ;;  %v2728_v54 = vcombine.high %v2240_v49, %v2247_v50  ;;  %v2284_v55 = vcombine.low %v2256_v51, %v2263_v52  ;;  %v2729_v56 = vcombine.high %v2256_v51, %v2263_v52 }
 0x6c0   : > { %v2275_v58 = vrot.slane %v2268_v21, %v4078_v48  ;;  %v2283_v60 = vrot.slane %v2728_v54, %v4078_v48  ;;  %v2291_v59 = vrot.slane %v2284_v55, %v4078_v48  ;;  %v2299_v61 = vrot.slane %v2729_v56, %v4078_v48 }
 0x6c2   : > { %v2300_v63 = vcombine.low %v2275_v58, %v2283_v60  ;;  %v2316_v0 = vcombine.low %v2291_v59, %v2299_v61  ;;  %v2301_v1 = vcombine.high %v2275_v58, %v2283_v60  ;;  %v2317_v2 = vcombine.high %v2291_v59, %v2299_v61 }
 0x6c4   : > { %v2308_v3 = vrot.slane %v2300_v63, %v4089_v4  ;;  %v2324_v5 = vrot.slane %v2316_v0, %v4089_v4  ;;  %v2315_v6 = vrot.slane %v2301_v1, %v4089_v4  ;;  %v2331_v7 = vrot.slane %v2317_v2, %v4089_v4 }
 0x6c6   : > { %v2333_v8 = vcombine.high %v2308_v3, %v2324_v5  ;;  %v2334_v45 = vcombine.low %v2315_v6, %v2331_v7  ;;  %v2335_v9 = vcombine.high %v2315_v6, %v2331_v7  ;;  %v2332_v48 = vcombine.low %v2308_v3, %v2324_v5 }
 0x6c8   : > { %2337 = vrot.lane.b32.xlu1 %v2333_v8, %s4442_s3  ;;  %s3376_s3 = scalar_lea.vmem %s4299_s26, 512 }
 0x6c9   : > { %p3377_p10 = scmp.ne.s32.totalorder %s4299_s26, %s3376_s3  ;;  %p3384_p4 = scmp.lt.s32.totalorder %s3382_s28, %s3376_s3 }
 0x6cb   : > { %p3378_p7 = pnand %p3377_p10, %p4509_p1  ;;  %p3385_p12 = por %p3384_p4, %p3383_p2 }
 0x6cc   : > { %2341 = vrot.lane.b32.xlu1 %v2334_v45, %s3578_s25  ;;  %s4304_s25 = scalar_lea.hbm %s4508_s0, %s2737_s4 }
 0x6cd   : > { %p3379_p5 = pneg %p3378_p7 }
 0x6cf   : > { %p3386_p13 = pnand %p3385_p12, %p3379_p5 }
 0x6d0   : > { %2345 = vrot.lane.b32.xlu1 %v2335_v9, %s3579_s5  ;;  %s2443_s5 = scalar_lea.sflag [#allocation20], %s4014_s24 }
 0x73a   : > { %v2338_v29 = vpop.permute.xlu1 %2337 }
 0x73b   : > { %v2348_v4 = vsel %vm1530_vm3, %v2332_v48, %v2338_v29 }
 0x73e   : > { %v2342_v10 = vpop.permute.xlu1 %2341 }
 0x73f   : > { %v2349_v11 = vsel %vm1847_vm6, %v2348_v4, %v2342_v10 }
 0x742   : > { %v2346_v12 = vpop.permute.xlu1 %2345 }
 0x743   : > { %v2351_v13 = vsel %vm2350_vm7, %v2349_v11, %v2346_v12 }
 0x744   : > { %2886 = vmatmul.mubr.msk.f32.vlgmr.msra.gmra.mrb[6].mxu0 %vm713_vm2, %v2351_v13 }
 0x745   : > { %3389 = shalt.err (!%p3386_p13)
}
 0x746   : > { %s3390_s13 = scalar_lea.hbm %s4304_s25, 512  ;;  %s3394_s6 = scalar_lea.hbm %s4508_s0, 2048 }
 0x747   : > { %p3391_p8 = scmp.ne.s32.totalorder %s4304_s25, %s3390_s13  ;;  %p3395_p9 = scmp.lt.u32.totalorder %s4304_s25, %s4508_s0 }
 0x748   : > { %p3396_p6 = scmp.lt.u32.totalorder %s3394_s6, %s3390_s13  ;;  %p3398_p10 = scmp.lt.u32.totalorder %s3390_s13, %s4304_s25 }
 0x749   : > { %p3392_p11 = pnand %p3391_p8, %p4509_p1 }
 0x74a   : > { %p3397_p0 = por %p3396_p6, %p3395_p9 }
 0x74b   : > { %p3393_p3 = pneg %p3392_p11 }
 0x74c   : > { %p3399_p7 = por %p3398_p10, %p3397_p0 }
 0x74e   : > { %p3400_p5 = pnand %p3399_p7, %p3393_p3 }
 0x750   : > { %3403 = shalt.err (!%p3400_p5)
}
 0x751   : > { %s3581_s3 = smov 128   ;;  %s3582_s28 = smov 256   ;;  %v2730_v14 = vld [vmem:[#allocation16] ss:$0 sm:$0xff] }
 0x752   : > { %s4510_s4 = smov 8   ;;  %s2734_s13 = sshll.u32 %s3542_s16, 1 }
 0x753   : > { %2969 = dma.vmem_to_hbm [thread:$0]  (%p4509_p1), %s4299_s26, 512, %s4304_s25, %s2443_s5, %s3581_s3, %s3582_s28, %s4510_s4  }
 0x754   : > { %s2454_s12 = sadd.s32 %s4507_s15, %s2734_s13  ;;  %s2458_s20 = sshll.u32 %s4044_s21, 4  ;;  %s4339_s20 = int_to_ptr.vmem [resolvable:$true] %s2458_s20 }
 0x755   : > { %s2735_s6 = sshll.u32 %s2454_s12, 7  ;;  %s4511_s7 = sld [smem:[#allocation43_spill]] }
 0x756   : > { %s2438_s16 = scalar_lea.sflag [#allocation6], %s4014_s24  ;;  %s3404_s15 = scalar_lea.vmem %s4339_s20, 128 }
 0x757   : > { %p3405_p2 = scmp.ne.s32.totalorder %s4339_s20, %s3404_s15  ;;  %s3583_s26 = smov [#allocation18]  }
 0x758   : > { %s3408_s25 = sshll.u32 %s3583_s26, 4  ;;  %s3409_s25 = int_to_ptr.vmem [resolvable:$false] %s3408_s25 }
 0x759   : > { %p3406_p4 = pnand %p3405_p2, %p4509_p1  ;;  %s3410_s5 = scalar_lea.vmem %s3409_s25, 256 }
 0x75a   : > { %p3411_p13 = scmp.lt.s32.totalorder %s4339_s20, %s3409_s25  ;;  %p3412_p8 = scmp.lt.s32.totalorder %s3410_s5, %s3404_s15 }
 0x75b   : > { %s4337_s23 = scalar_lea.hbm %s4511_s7, %s2735_s6  ;;  %p3407_p12 = pneg %p3406_p4 }
 0x75c   : > { %p3413_p11 = por %p3412_p8, %p3411_p13 }
 0x75e   : > { %p3414_p3 = pnand %p3413_p11, %p3407_p12 }
 0x817   : > { %v2432_v15 = vpop.f32.mrb[6].mxu0 }
 0x818   : > { %v2433_v16 = vadd.f32 %v2730_v14, %v2432_v15  ;;  %v2887_v17 = vpop.f32.mrb[7].mxu0 }
 0x81a   : > { %2436 = vst.msk [vmem:[%s4044_s21] sm:$0xff] %vm713_vm2, %v2433_v16 }
 0x81b   : > { %3417 = shalt.err (!%p3414_p3)
}
 0x81c   : > { %s3418_s24 = scalar_lea.hbm %s4337_s23, 128  ;;  %s3422_s3 = scalar_lea.hbm %s4511_s7, 512 }
 0x81d   : > { %p3419_p9 = scmp.ne.s32.totalorder %s4337_s23, %s3418_s24  ;;  %p3423_p10 = scmp.lt.u32.totalorder %s4337_s23, %s4511_s7 }
 0x81e   : > { %p3424_p7 = scmp.lt.u32.totalorder %s3422_s3, %s3418_s24  ;;  %p3426_p2 = scmp.lt.u32.totalorder %s3418_s24, %s4337_s23 }
 0x81f   : > { %p3420_p6 = pnand %p3419_p9, %p4509_p1 }
 0x820   : > { %p3425_p5 = por %p3424_p7, %p3423_p10 }
 0x821   : > { %p3421_p0 = pneg %p3420_p6 }
 0x822   : > { %p3427_p4 = por %p3426_p2, %p3425_p5 }
 0x824   : > { %p3428_p12 = pnand %p3427_p4, %p3421_p0 }
 0x826   : > { %3431 = shalt.err (!%p3428_p12)
}
 0x827   : > { %2968 = dma.vmem_to_hbm [thread:$0]  (%p4509_p1), %s4339_s20, 128, %s4337_s23, %s2438_s16  }
 0x828 PF: > { %p3014_p13 = scmp.ge.s32.totalorder %s3554_s19, 2  ;;  %s2487_s13 = sand.u32 1, %s3514_s30  }
 0x829   : > { %p4512_p8 = scmp.ne.s32.totalorder %s4490_s8, 0  ;;  %s2488_s12 = scalar_lea.sflag [#allocation6], %s2487_s13 }
 0x82b   : > { %p2999_p11 = pnand %p3014_p13, %p4512_p8 }
 0x82d   : > { %3505 = dma.done.wait (!%p2999_p11), %s2488_s12, 128  }
 0x82e   : > { %3507 = vsyncadd (!%p2999_p11), %s2488_s12, 4294967168  ;;  %s2497_s6 = scalar_lea.sflag [#allocation20], %s2487_s13 }
 0x82f   : > { %3509 = dma.done.wait (!%p2999_p11), %s2497_s6, 512  }
 0x830   : > { %3511 = vsyncadd (!%p2999_p11), %s2497_s6, 4294966784  ;;  %s33_s19 = sadd.s32 1, %s3554_s19   ;;  %s4513_s12 = sld [smem:[#allocation30_spill]] }
 0x831   : > { %p30_p3 = scmp.ge.s32.totalorder %s33_s19, 6   ;;  %s4514_s30 = smov %s3518_s10 }
 0x832   : > { %s4515_s10 = smov %s3522_s11  ;;  %s4516_s11 = smov %s3954_s9 }
 0x833   : > { %s4517_s13 = smov %s3534_s14  ;;  %s4518_s14 = smov %s3951_s2 }
 0x834   : > { %s4519_s15 = smov %s3546_s17  ;;  %s4520_s16 = smov %s3550_s18 }
 0x835   : > { %s4521_s17 = smov %s4524_s22  ;;  %s4522_s18 = smov %s4528_s29 }
 0x836   :  { %32 = sbr.rel (!%p30_p3) target bundleno = 26 (0x1a), region = 154 }
 0x83d   :  { %2502 = vsyncpa [#allocation5], 1 }
 0x83e   :  { %2504 = vsyncpa [#allocation5 + $0x1], 1 }
 0x83f   :  { %2505 = vsyncpa [#allocation8], 1 }
 0x840   :  { %2507 = vsyncpa [#allocation8 + $0x1], 1 }
 0x841   :  { %2508 = vsyncpa [#allocation11], 1 }
 0x842   :  { %2509 = vsyncpa [#allocation14], 1 }
 0x843   :  { %2510 = vsyncpa [#allocation17], 1 }
 0x844   :  { %2511 = vsyncpa [#allocation6], 1 }
 0x845   :  { %2513 = vsyncpa [#allocation6 + $0x1], 1 }
 0x846   :  { %2514 = vsyncpa [#allocation20], 1 }
 0x847   :  { %2516 = vsyncpa [#allocation20 + $0x1], 1 }

</bundles_post_ra>
